<compile_context>
chip_gen: v6e
topology: v6e:2x2x1
jax: 0.10.0
libtpu: 0.0.40
codegen_flags: <defaults>
</compile_context>

<pallas_src>
import functools

import jax
import jax.numpy as jnp
from jax.experimental import pallas as pl
from jax.experimental.pallas import tpu as pltpu


def _head_kernel(feats_ref, w1_ref, b1_ref, w2_ref, b2_ref, w3_ref, b3_ref,
                 out_ref, acc_ref, *, inv_hw):
    # feats_ref: (TB, TC, HW) bf16 — native NCHW chunk, spatial axis on lanes.
    k = pl.program_id(1)

    @pl.when(k == 0)
    def _init():
        acc_ref[...] = jnp.zeros_like(acc_ref)

    # ReLU + adaptive-avg-pool(1,1) for this channel chunk (f32 accumulation).
    f = jnp.maximum(feats_ref[...].astype(jnp.float32), 0.0)        # (TB, TC, HW)
    pooled = jnp.sum(f, axis=-1) * inv_hw                           # (TB, TC) f32

    # Partial contraction of Linear(1920 -> 512) against this chunk of w1.
    acc_ref[...] += jnp.dot(pooled.astype(jnp.bfloat16), w1_ref[...],
                            preferred_element_type=jnp.float32)

    @pl.when(k == pl.num_programs(1) - 1)
    def _finalize():
        # Linear(1920->512) bias + ReLU   (Dropout = identity, eval mode)
        h1 = jnp.maximum(acc_ref[...] + b1_ref[...], 0.0)
        # Linear(512->128) + ReLU         (Dropout = identity, eval mode)
        h2 = jnp.dot(h1.astype(jnp.bfloat16), w2_ref[...],
                     preferred_element_type=jnp.float32) + b2_ref[...]
        h2 = jnp.maximum(h2, 0.0)
        # Linear(128 -> num_classes)
        out = jnp.dot(h2.astype(jnp.bfloat16), w3_ref[...],
                      preferred_element_type=jnp.float32) + b3_ref[...]
        out_ref[...] = out.astype(out_ref.dtype)


def densenet_head_forward(feats_nchw, w1, b1, w2, b2, w3, b3):
    """feats_nchw: (B, C=1920, H, W) feature map from the densenet201 backbone (bf16)."""
    B, C, H, W = feats_nchw.shape
    HW = H * W
    # Pure reshape view of the native NCHW layout — no transpose copy, no HBM round-trip.
    feats = feats_nchw.reshape(B, C, HW)

    H1 = w1.shape[1]   # 512
    H2 = w2.shape[1]   # 128
    NC = w3.shape[1]   # num_classes

    # Channel chunking so w1 chunk DMAs overlap the pooling compute.
    TC = next((t for t in (384, 256, 128) if C % t == 0), C)
    # Batch tiling keeps VMEM bounded as B grows; weights stay resident across batch blocks.
    TB = min(B, 128)
    grid = (pl.cdiv(B, TB), C // TC)

    kernel = functools.partial(_head_kernel, inv_hw=1.0 / HW)

    return pl.pallas_call(
        kernel,
        out_shape=jax.ShapeDtypeStruct((B, NC), jnp.float32),
        grid_spec=pltpu.PrefetchScalarGridSpec(
            num_scalar_prefetch=0,
            grid=grid,
            in_specs=[
                pl.BlockSpec((TB, TC, HW), lambda i, k: (i, k, 0)),   # feature-map chunk
                pl.BlockSpec((TC, H1), lambda i, k: (k, 0)),          # w1 chunk (streamed)
                pl.BlockSpec((1, H1), lambda i, k: (0, 0)),           # b1 (resident)
                pl.BlockSpec((H1, H2), lambda i, k: (0, 0)),          # w2 (resident)
                pl.BlockSpec((1, H2), lambda i, k: (0, 0)),           # b2 (resident)
                pl.BlockSpec((H2, NC), lambda i, k: (0, 0)),          # w3 (resident)
                pl.BlockSpec((1, NC), lambda i, k: (0, 0)),           # b3 (resident)
            ],
            out_specs=pl.BlockSpec((TB, NC), lambda i, k: (i, 0)),
            scratch_shapes=[pltpu.VMEM((TB, H1), jnp.float32)],       # f32 h1 accumulator
        ),
        compiler_params=pltpu.CompilerParams(
            dimension_semantics=("parallel", "arbitrary"),
            vmem_limit_bytes=32 * 1024 * 1024,
        ),
    )(feats, w1, b1, w2, b2, w3, b3)


def init_params(key, num_classes=2):
    """PyTorch nn.Linear-style init: U(-1/sqrt(fan_in), 1/sqrt(fan_in)).
    Weights stored as (in, out) in bf16 (halves the dominant DMA); biases f32."""
    dims = [(1920, 512), (512, 128), (128, num_classes)]
    params = []
    for fan_in, fan_out in dims:
        key, kw, kb = jax.random.split(key, 3)
        bound = 1.0 / (fan_in ** 0.5)
        w = jax.random.uniform(kw, (fan_in, fan_out), jnp.float32,
                               -bound, bound).astype(jnp.bfloat16)
        b = jax.random.uniform(kb, (1, fan_out), jnp.float32, -bound, bound)
        params += [w, b]
    return params


def reference_forward(x_nchw, w1, b1, w2, b2, w3, b3):
    """Pure-JAX reference with matching precision (bf16 weights/activations, f32 accum)."""
    f = jnp.maximum(x_nchw.astype(jnp.float32), 0.0)
    pooled = jnp.mean(f, axis=(2, 3))                                # (B, C) f32
    h1 = jnp.maximum(
        jnp.dot(pooled.astype(jnp.bfloat16), w1,
                preferred_element_type=jnp.float32) + b1, 0.0)
    h2 = jnp.maximum(
        jnp.dot(h1.astype(jnp.bfloat16), w2,
                preferred_element_type=jnp.float32) + b2, 0.0)
    return jnp.dot(h2.astype(jnp.bfloat16), w3,
                   preferred_element_type=jnp.float32) + b3


if __name__ == "__main__":
    key = jax.random.PRNGKey(0)
    k_x, k_p = jax.random.split(key)

    # densenet201 feature map for a 224x224 input is (B, 1920, 7, 7); use batch=2.
    # TODO(synk): backbone convs not reproduced; feature map is synthesized (in bf16).
    B, C, H, W = 2, 1920, 7, 7
    x = jax.random.normal(k_x, (B, C, H, W), dtype=jnp.float32).astype(jnp.bfloat16)

    w1, b1, w2, b2, w3, b3 = init_params(k_p, num_classes=2)

    out = jax.jit(densenet_head_forward)(x, w1, b1, w2, b2, w3, b3)
    out = jax.block_until_ready(out)

    ref = reference_forward(x, w1, b1, w2, b2, w3, b3)
    assert out.shape == (B, 2), out.shape
    assert jnp.allclose(out, ref, atol=1e-2, rtol=1e-2), (out, ref)

    print("KERNEL_OK")
</pallas_src>

<mosaic_0001>
module attributes {stable_mosaic.version = 11 : i64} {
  func.func @_head_kernel(%arg0: i32, %arg1: i32, %arg2: memref<2x384x49xbf16, #tpu.memory_space<vmem>>, %arg3: memref<384x512xbf16, #tpu.memory_space<vmem>>, %arg4: memref<1x512xf32, #tpu.memory_space<vmem>>, %arg5: memref<512x128xbf16, #tpu.memory_space<vmem>>, %arg6: memref<1x128xf32, #tpu.memory_space<vmem>>, %arg7: memref<128x2xbf16, #tpu.memory_space<vmem>>, %arg8: memref<1x2xf32, #tpu.memory_space<vmem>>, %arg9: memref<2x2xf32, #tpu.memory_space<vmem>>, %arg10: memref<2x512xf32, #tpu.memory_space<vmem>>) attributes {dimension_semantics = [#tpu.dimension_semantics<parallel>, #tpu.dimension_semantics<arbitrary>], iteration_bounds = array<i64: 1, 5>, scalar_prefetch = 0 : i64, scratch_operands = 1 : i64, tpu.core_type = #tpu.core_type<tc>, window_params = [{transform_indices = @transform_0, window_bounds = array<i64: 2, 384, 49>}, {transform_indices = @transform_1, window_bounds = array<i64: 384, 512>}, {pipeline_mode = #tpu.pipeline_mode<synchronous>, transform_indices = @transform_2, window_bounds = array<i64: 1, 512>}, {pipeline_mode = #tpu.pipeline_mode<synchronous>, transform_indices = @transform_3, window_bounds = array<i64: 512, 128>}, {pipeline_mode = #tpu.pipeline_mode<synchronous>, transform_indices = @transform_4, window_bounds = array<i64: 1, 128>}, {pipeline_mode = #tpu.pipeline_mode<synchronous>, transform_indices = @transform_5, window_bounds = array<i64: 128, 2>}, {pipeline_mode = #tpu.pipeline_mode<synchronous>, transform_indices = @transform_6, window_bounds = array<i64: 1, 2>}, {transform_indices = @transform_7, window_bounds = array<i64: 2, 2>}]} {
    %c0_i32 = arith.constant 0 : i32
    %0 = arith.cmpi eq, %arg1, %c0_i32 : i32
    %1 = arith.extui %0 : i1 to i32
    %c0_i32_0 = arith.constant 0 : i32
    %2 = arith.cmpi ne, %1, %c0_i32_0 : i32
    scf.if %2 {
      %cst_13 = arith.constant 0.000000e+00 : f32
      %19 = vector.broadcast %cst_13 : f32 to vector<2x512xf32>
      %c0_14 = arith.constant 0 : index
      %c0_15 = arith.constant 0 : index
      %20 = vector.load %arg10[%c0_14, %c0_15] : memref<2x512xf32, #tpu.memory_space<vmem>>, vector<2x512xf32>
      tpu.vector_store %arg10[%c0_14, %c0_15], %19 {strides = array<i32>} : memref<2x512xf32, #tpu.memory_space<vmem>>, vector<2x512xf32>,
    } else {
    }
    %c0 = arith.constant 0 : index
    %c0_1 = arith.constant 0 : index
    %c0_2 = arith.constant 0 : index
    %3 = vector.load %arg2[%c0, %c0_1, %c0_2] : memref<2x384x49xbf16, #tpu.memory_space<vmem>>, vector<2x384x49xbf16>
    %4 = arith.extf %3 : vector<2x384x49xbf16> to vector<2x384x49xf32>
    %cst = arith.constant 0.000000e+00 : f32
    %5 = vector.broadcast %cst : f32 to vector<2x384x49xf32>
    %6 = arith.maximumf %4, %5 : vector<2x384x49xf32>
    %cst_3 = arith.constant dense<0.000000e+00> : vector<2x384xf32>
    %7 = vector.multi_reduction <add>, %6, %cst_3 [2] : vector<2x384x49xf32> to vector<2x384xf32>
    %cst_4 = arith.constant 0.0204081628 : f32
    %8 = vector.broadcast %cst_4 : f32 to vector<2x384xf32>
    %9 = arith.mulf %7, %8 : vector<2x384xf32>
    %c0_5 = arith.constant 0 : index
    %c0_6 = arith.constant 0 : index
    %10 = vector.load %arg10[%c0_5, %c0_6] : memref<2x512xf32, #tpu.memory_space<vmem>>, vector<2x512xf32>
    %11 = arith.truncf %9 : vector<2x384xf32> to vector<2x384xbf16>
    %c0_7 = arith.constant 0 : index
    %c0_8 = arith.constant 0 : index
    %12 = vector.load %arg3[%c0_7, %c0_8] : memref<384x512xbf16, #tpu.memory_space<vmem>>, vector<384x512xbf16>
    %cst_9 = arith.constant dense<0.000000e+00> : vector<2x512xf32>
    %13 = tpu.matmul %11, %12, %cst_9 {dimension_numbers = #tpu.dot_dimension_numbers<[1], [0], [0], [1], [0, 0, 1, 1], [], []>} : vector<2x384xbf16>, vector<384x512xbf16>, vector<2x512xf32> -> vector<2x512xf32>
    %14 = arith.addf %10, %13 : vector<2x512xf32>
    %c0_10 = arith.constant 0 : index
    %c0_11 = arith.constant 0 : index
    %15 = vector.load %arg10[%c0_10, %c0_11] : memref<2x512xf32, #tpu.memory_space<vmem>>, vector<2x512xf32>
    tpu.vector_store %arg10[%c0_10, %c0_11], %14 {strides = array<i32>} : memref<2x512xf32, #tpu.memory_space<vmem>>, vector<2x512xf32>,
    %c4_i32 = arith.constant 4 : i32
    %16 = arith.cmpi eq, %arg1, %c4_i32 : i32
    %17 = arith.extui %16 : i1 to i32
    %c0_i32_12 = arith.constant 0 : i32
    %18 = arith.cmpi ne, %17, %c0_i32_12 : i32
    scf.if %18 {
      %c0_13 = arith.constant 0 : index
      %c0_14 = arith.constant 0 : index
      %19 = vector.load %arg10[%c0_13, %c0_14] : memref<2x512xf32, #tpu.memory_space<vmem>>, vector<2x512xf32>
      %c0_15 = arith.constant 0 : index
      %c0_16 = arith.constant 0 : index
      %20 = vector.load %arg4[%c0_15, %c0_16] : memref<1x512xf32, #tpu.memory_space<vmem>>, vector<1x512xf32>
      %21 = vector.broadcast %20 : vector<1x512xf32> to vector<2x512xf32>
      %22 = arith.addf %19, %21 : vector<2x512xf32>
      %cst_17 = arith.constant 0.000000e+00 : f32
      %23 = vector.broadcast %cst_17 : f32 to vector<2x512xf32>
      %24 = arith.maximumf %22, %23 : vector<2x512xf32>
      %25 = arith.truncf %24 : vector<2x512xf32> to vector<2x512xbf16>
      %c0_18 = arith.constant 0 : index
      %c0_19 = arith.constant 0 : index
      %26 = vector.load %arg5[%c0_18, %c0_19] : memref<512x128xbf16, #tpu.memory_space<vmem>>, vector<512x128xbf16>
      %cst_20 = arith.constant dense<0.000000e+00> : vector<2x128xf32>
      %27 = tpu.matmul %25, %26, %cst_20 {dimension_numbers = #tpu.dot_dimension_numbers<[1], [0], [0], [1], [0, 0, 1, 1], [], []>} : vector<2x512xbf16>, vector<512x128xbf16>, vector<2x128xf32> -> vector<2x128xf32>
      %c0_21 = arith.constant 0 : index
      %c0_22 = arith.constant 0 : index
      %28 = vector.load %arg6[%c0_21, %c0_22] : memref<1x128xf32, #tpu.memory_space<vmem>>, vector<1x128xf32>
      %29 = vector.broadcast %28 : vector<1x128xf32> to vector<2x128xf32>
      %30 = arith.addf %27, %29 : vector<2x128xf32>
      %cst_23 = arith.constant 0.000000e+00 : f32
      %31 = vector.broadcast %cst_23 : f32 to vector<2x128xf32>
      %32 = arith.maximumf %30, %31 : vector<2x128xf32>
      %33 = arith.truncf %32 : vector<2x128xf32> to vector<2x128xbf16>
      %c0_24 = arith.constant 0 : index
      %c0_25 = arith.constant 0 : index
      %34 = vector.load %arg7[%c0_24, %c0_25] : memref<128x2xbf16, #tpu.memory_space<vmem>>, vector<128x2xbf16>
      %cst_26 = arith.constant dense<0.000000e+00> : vector<2x2xf32>
      %35 = tpu.matmul %33, %34, %cst_26 {dimension_numbers = #tpu.dot_dimension_numbers<[1], [0], [0], [1], [0, 0, 1, 1], [], []>} : vector<2x128xbf16>, vector<128x2xbf16>, vector<2x2xf32> -> vector<2x2xf32>
      %c0_27 = arith.constant 0 : index
      %c0_28 = arith.constant 0 : index
      %36 = vector.load %arg8[%c0_27, %c0_28] : memref<1x2xf32, #tpu.memory_space<vmem>>, vector<1x2xf32>
      %37 = vector.broadcast %36 : vector<1x2xf32> to vector<2x2xf32>
      %38 = arith.addf %35, %37 : vector<2x2xf32>
      %c0_29 = arith.constant 0 : index
      %c0_30 = arith.constant 0 : index
      %39 = vector.load %arg9[%c0_29, %c0_30] : memref<2x2xf32, #tpu.memory_space<vmem>>, vector<2x2xf32>
      tpu.vector_store %arg9[%c0_29, %c0_30], %38 {strides = array<i32>} : memref<2x2xf32, #tpu.memory_space<vmem>>, vector<2x2xf32>,
    } else {
    }
    return
  }
  func.func @transform_0(%arg0: i32, %arg1: i32) -> (i32, i32, i32) {
    %c0_i32 = arith.constant 0 : i32
    %c0_i32_0 = arith.constant 0 : i32
    return %arg0, %arg1, %c0_i32 : i32, i32, i32
  }
  func.func @transform_1(%arg0: i32, %arg1: i32) -> (i32, i32) {
    %c0_i32 = arith.constant 0 : i32
    %c0_i32_0 = arith.constant 0 : i32
    return %arg1, %c0_i32 : i32, i32
  }
  func.func @transform_2(%arg0: i32, %arg1: i32) -> (i32, i32) {
    %c0_i32 = arith.constant 0 : i32
    %c0_i32_0 = arith.constant 0 : i32
    %c0_i32_1 = arith.constant 0 : i32
    return %c0_i32, %c0_i32_0 : i32, i32
  }
  func.func @transform_3(%arg0: i32, %arg1: i32) -> (i32, i32) {
    %c0_i32 = arith.constant 0 : i32
    %c0_i32_0 = arith.constant 0 : i32
    %c0_i32_1 = arith.constant 0 : i32
    return %c0_i32, %c0_i32_0 : i32, i32
  }
  func.func @transform_4(%arg0: i32, %arg1: i32) -> (i32, i32) {
    %c0_i32 = arith.constant 0 : i32
    %c0_i32_0 = arith.constant 0 : i32
    %c0_i32_1 = arith.constant 0 : i32
    return %c0_i32, %c0_i32_0 : i32, i32
  }
  func.func @transform_5(%arg0: i32, %arg1: i32) -> (i32, i32) {
    %c0_i32 = arith.constant 0 : i32
    %c0_i32_0 = arith.constant 0 : i32
    %c0_i32_1 = arith.constant 0 : i32
    return %c0_i32, %c0_i32_0 : i32, i32
  }
  func.func @transform_6(%arg0: i32, %arg1: i32) -> (i32, i32) {
    %c0_i32 = arith.constant 0 : i32
    %c0_i32_0 = arith.constant 0 : i32
    %c0_i32_1 = arith.constant 0 : i32
    return %c0_i32, %c0_i32_0 : i32, i32
  }
  func.func @transform_7(%arg0: i32, %arg1: i32) -> (i32, i32) {
    %c0_i32 = arith.constant 0 : i32
    %c0_i32_0 = arith.constant 0 : i32
    return %arg0, %c0_i32 : i32, i32
  }
}

</mosaic_0001>

<bundles_post_ra>
// kernel: densenet_head_forward.1
= control target key start
LH: loop header
LB: loop body
LE: loop exit
PB: predicated region body
PF: predicated region fallthrough
CT: control target
= control target key end

     0   :  { %s5594_s0 = inlined_call_operand.vmem [shape: bf16[2,1920,49], index: 0, kind: input, shape index: {}]   ;;  %s5595_s1 = inlined_call_operand.hbm [shape: bf16[1920,512], index: 1, kind: input, shape index: {}]   ;;  %s5596_s2 = inlined_call_operand.hbm [shape: f32[1,512], index: 2, kind: input, shape index: {}]   ;;  %s5597_s3 = inlined_call_operand.hbm [shape: bf16[512,128], index: 3, kind: input, shape index: {}]   ;;  %s5598_s4 = inlined_call_operand.hbm [shape: f32[1,128], index: 4, kind: input, shape index: {}]   ;;  %s5599_s5 = inlined_call_operand.vmem [shape: bf16[128,2], index: 5, kind: input, shape index: {}]   ;;  %s5600_s6 = inlined_call_operand.hbm [shape: f32[1,2], index: 6, kind: input, shape index: {}]   ;;  %s5601_s7 = inlined_call_operand.hbm [shape: f32[2,2], index: 7, kind: output, shape index: {}]  }
   0x1   :  { %5607 = sst [smem:[#allocation18_spill]] %s5594_s0 }
   0x2   :  { %12 = vsyncpa [#allocation5], 0 }
   0x3   :  { %14 = vsyncpa [#allocation5 + $0x1], 0 }
   0x4   :  { %15 = vsyncpa [#allocation8], 0 }
   0x5   :  { %16 = vsyncpa [#allocation11], 0 }
   0x6   :  { %17 = vsyncpa [#allocation6], 0  ;;  %s4658_s24 = smov 0   ;;  %s4660_s25 = smov 0  }
   0x7   :  { %s4662_s26 = smov 0   ;;  %s4664_s27 = smov 0  }
   0x8   :  { %s4666_s28 = smov 0   ;;  %s4668_s29 = smov 0  }
   0x9 LB: > { %s5606_s30 = sadd.s32 4294967295, %s4601_s29   ;;  %s32_s8 = sadd.s32 1, %s4597_s28  ;;  %s4601_s29 = sphi %s4668_s29, %s23_s29   ;;  %s4597_s28 = sphi %s4666_s28, %s5623_s28   ;;  %s4593_s27 = sphi %s4664_s27, %s5622_s27   ;;  %s4589_s26 = sphi %s4662_s26, %s5621_s26   ;;  %s4585_s25 = sphi %s4660_s25, %s5620_s25   ;;  %s4581_s24 = sphi %s4658_s24, %s5619_s24  }
   0xa   : > { %p33_p0 = scmp.ge.s32.totalorder %s32_s8, 5  ;;  %s44_s9 = sadd.s32 1, %s4589_s26 }
   0xb   : > { %p51_p1 = scmp.ne.s32.totalorder %s4589_s26, %s4585_s25  ;;  %p52_p2 = scmp.eq.s32.totalorder %s4601_s29, 0 }
   0xc   : > { %s5625_s8 = smov (%p33_p0, %s32_s8), 0  ;;  %p83_p4 = scmp.ne.s32.totalorder %s4585_s25, %s4581_s24 }
   0xd   : > { %p4694_p3 = por %p52_p2, %p51_p1  ;;  %s40_s11 = ssub.s32 %s4597_s28, %s5625_s8 }
   0xe   : > { %p4703_p5 = scmp.eq.s32.totalorder %s5606_s30, 0  ;;  %p42_p6 = scmp.eq.s32.totalorder %s40_s11, 0 }
   0xf   : > { %p3616_p7 = scmp.ge.s32.totalorder %s4601_s29, 1  ;;  %p225_p9 = scmp.lt.s32.totalorder %s4601_s29, 6 }
  0x10   : > { %s5609_s12 = scalar_select %p4703_p5, 1, 0 }
  0x11   : > { %p4710_p8 = por %p4703_p5, %p83_p4  ;;  %p4718_p10 = pnand %p3616_p7, %p225_p9 }
  0x12   : > { %s4716_s14 = scalar_select %p42_p6, %s4589_s26, %s44_s9  }
  0x13   : > { %s5610_s13 = scalar_select %p4710_p8, 1, 0 }
  0x14   : > { %s5611_s15 = scalar_select %p4718_p10, 1, 0 }
  0x15   : > { %p4116_p11 = pneg %p4718_p10  ;;  %s4603_s16 = smov [#allocation7]  }
  0x16   : > { %s238_s17 = sshll.u32 %s4603_s16, 4  ;;  %s4604_s18 = smov [#allocation10]   ;;  %s239_s17 = int_to_ptr.vmem [resolvable:$true] %s238_s17 }
  0x17   : > { %s262_s19 = sshll.u32 %s4604_s18, 4  ;;  %p4726_p12 = pnand %p4116_p11, %p4703_p5  ;;  %s263_s19 = int_to_ptr.vmem [resolvable:$true] %s262_s19 }
  0x18   : > { %s4605_s21 = smov [#allocation9]   ;;  %s4396_s23 = scalar_lea.vmem %s239_s17, 64 }
  0x19   : > { %s248_s22 = sshll.u32 %s4605_s21, 4  ;;  %p4387_p13 = pneg %p4726_p12  ;;  %s249_s22 = int_to_ptr.vmem [resolvable:$true] %s248_s22 }
  0x1a   : > { %p4397_p0 = scmp.ne.s32.totalorder %s239_s17, %s4396_s23  ;;  %p4404_p4 = scmp.lt.s32.totalorder %s239_s17, %s239_s17 }
  0x1b   : > { %p4405_p6 = scmp.lt.s32.totalorder %s4396_s23, %s4396_s23 }
  0x1c   : > { %p4399_p1 = pnand %p4397_p0, %p4387_p13 }
  0x1d   : > { %p4406_p7 = por %p4405_p6, %p4404_p4 }
  0x1e   : > { %p4400_p2 = pneg %p4399_p1 }
  0x20   : > { %p4407_p9 = pnand %p4406_p7, %p4400_p2 }
  0x22   : > { %4410 = shalt.err (!%p4407_p9)
}
  0x23   : > { %4119 = dma.hbm_to_vmem [thread:$0]  (!%p4726_p12), %s5596_s2, 64, %s239_s17, [#allocation8]  }
  0x24   : > { %s4422_s11 = scalar_lea.vmem %s263_s19, 16  ;;  %s4429_s16 = scalar_lea.vmem %s263_s19, 32 }
  0x25   : > { %p4423_p11 = scmp.ne.s32.totalorder %s263_s19, %s4422_s11  ;;  %p4430_p0 = scmp.lt.s32.totalorder %s263_s19, %s263_s19 }
  0x26   : > { %p4431_p1 = scmp.lt.s32.totalorder %s4429_s16, %s4422_s11 }
  0x27   : > { %p4425_p5 = pnand %p4423_p11, %p4387_p13 }
  0x28   : > { %p4432_p10 = por %p4431_p1, %p4430_p0 }
  0x29   : > { %p4426_p8 = pneg %p4425_p5 }
  0x2b   : > { %p4433_p4 = pnand %p4432_p10, %p4426_p8 }
  0x2d   : > { %4436 = shalt.err (!%p4433_p4)
}
  0x2e   : > { %4125 = dma.hbm_to_vmem [thread:$0]  (!%p4726_p12), %s5598_s4, 16, %s263_s19, [#allocation11]  }
  0x2f   : > { %s4448_s17 = scalar_lea.vmem %s249_s22, 4096  ;;  %p4456_p7 = scmp.lt.s32.totalorder %s249_s22, %s249_s22 }
  0x30   : > { %p4449_p2 = scmp.ne.s32.totalorder %s249_s22, %s4448_s17  ;;  %p4457_p9 = scmp.lt.s32.totalorder %s4448_s17, %s4448_s17 }
  0x32   : > { %p4451_p6 = pnand %p4449_p2, %p4387_p13  ;;  %p4458_p11 = por %p4457_p9, %p4456_p7 }
  0x34   : > { %p4452_p5 = pneg %p4451_p6 }
  0x36   : > { %p4459_p0 = pnand %p4458_p11, %p4452_p5 }
  0x38   : > { %4462 = shalt.err (!%p4459_p0)
}
  0x39   : > { %s4606_s23 = smov 64   ;;  %s4607_s24 = smov 4  }
  0x3a   : > { %4122 = dma.hbm_to_vmem [thread:$0]  (!%p4726_p12), %s5597_s3, 4096, %s249_s22, [#allocation8], %s4606_s23, %s4606_s23, %s4607_s24  }
  0x3b   : > { %s4608_s19 = smov [#allocation12]  }
  0x3c   : > { %s276_s16 = sshll.u32 %s4608_s19, 4  ;;  %s277_s16 = int_to_ptr.vmem [resolvable:$true] %s276_s16 }
  0x3d   : > { %s4474_s18 = scalar_lea.vmem %s277_s16, 16  ;;  %s4481_s21 = scalar_lea.vmem %s277_s16, 32 }
  0x3e   : > { %p4475_p8 = scmp.ne.s32.totalorder %s277_s16, %s4474_s18  ;;  %p4482_p4 = scmp.lt.s32.totalorder %s277_s16, %s277_s16 }
  0x3f   : > { %p4483_p2 = scmp.lt.s32.totalorder %s4481_s21, %s4474_s18 }
  0x40   : > { %p4477_p10 = pnand %p4475_p8, %p4387_p13 }
  0x41   : > { %p4484_p6 = por %p4483_p2, %p4482_p4 }
  0x42   : > { %p4478_p1 = pneg %p4477_p10 }
  0x44   : > { %p4485_p5 = pnand %p4484_p6, %p4478_p1 }
  0x46   : > { %4488 = shalt.err (!%p4485_p5)
}
  0x47   : > { %4128 = dma.hbm_to_vmem [thread:$0]  (!%p4726_p12), %s5600_s6, 16, %s277_s16, [#allocation11]  }
  0x48   : > { %p3621_p7 = scmp.ge.s32.totalorder %s4601_s29, 5 }
  0x4a   : > { %283 = sbr.rel (%p3621_p7) target bundleno = 129 (0x81), region = 36 }
  0x4f   : > { %286 = sbr.rel (!%p4694_p3) target bundleno = 112 (0x70), region = 40  ;;  %s288_s22 = sand.u32 (%p4694_p3), 1, %s4589_s26  }
  0x50   : > { %s3774_s23 = smul.u32 (%p4694_p3), 192, %s4597_s28  ;;  %s5613_s0 = sld [smem:[#allocation18_spill]] (%p4694_p3) }
  0x51   : > { %s4090_s24 = smul.u32 (%p4694_p3), 384, %s288_s22 }
  0x53   : > { %s4777_s20 = scalar_lea.vmem (%p4694_p3), [#allocation3], %s4090_s24 }
  0x56   : > { %s4772_s18 = scalar_lea.vmem %s5613_s0, %s3774_s23 }
  0x57   : > { %v313_v0 = vld [vmem:[%s4772_s18] sm:$0xff]   ;;  %v317_v1 = vld [vmem:[%s4772_s18 + $0x8] sm:$0xff]   ;;  %v321_v2 = vld [vmem:[%s4772_s18 + $0x10] sm:$0xff]  }
  0x58   : > { %314 = vst [vmem:[%s4777_s20] sm:$0xff] %v313_v0   ;;  %318 = vst [vmem:[%s4777_s20 + $0x8] sm:$0xff] %v317_v1   ;;  %v325_v3 = vld [vmem:[%s4772_s18 + $0x18] sm:$0xff]   ;;  %v329_v4 = vld [vmem:[%s4772_s18 + $0x20] sm:$0xff]  }
  0x59   : > { %322 = vst [vmem:[%s4777_s20 + $0x10] sm:$0xff] %v321_v2   ;;  %v333_v5 = vld [vmem:[%s4772_s18 + $0x28] sm:$0xff]   ;;  %326 = vst [vmem:[%s4777_s20 + $0x18] sm:$0xff] %v325_v3   ;;  %v337_v6 = vld [vmem:[%s4772_s18 + $0x30] sm:$0xff]  }
  0x5a   : > { %330 = vst [vmem:[%s4777_s20 + $0x20] sm:$0xff] %v329_v4   ;;  %334 = vst [vmem:[%s4777_s20 + $0x28] sm:$0xff] %v333_v5   ;;  %v341_v7 = vld [vmem:[%s4772_s18 + $0x38] sm:$0xff]   ;;  %v345_v8 = vld [vmem:[%s4772_s18 + $0x40] sm:$0xff]  }
  0x5b   : > { %338 = vst [vmem:[%s4777_s20 + $0x30] sm:$0xff] %v337_v6   ;;  %342 = vst [vmem:[%s4777_s20 + $0x38] sm:$0xff] %v341_v7   ;;  %v349_v9 = vld [vmem:[%s4772_s18 + $0x48] sm:$0xff]   ;;  %v353_v10 = vld [vmem:[%s4772_s18 + $0x50] sm:$0xff]  }
  0x5c   : > { %346 = vst [vmem:[%s4777_s20 + $0x40] sm:$0xff] %v345_v8   ;;  %v357_v11 = vld [vmem:[%s4772_s18 + $0x58] sm:$0xff]   ;;  %350 = vst [vmem:[%s4777_s20 + $0x48] sm:$0xff] %v349_v9   ;;  %v361_v12 = vld [vmem:[%s4772_s18 + $0x60] sm:$0xff]  }
  0x5d   : > { %354 = vst [vmem:[%s4777_s20 + $0x50] sm:$0xff] %v353_v10   ;;  %358 = vst [vmem:[%s4777_s20 + $0x58] sm:$0xff] %v357_v11   ;;  %v365_v13 = vld [vmem:[%s4772_s18 + $0x68] sm:$0xff]   ;;  %v369_v14 = vld [vmem:[%s4772_s18 + $0x70] sm:$0xff]  }
  0x5e   : > { %362 = vst [vmem:[%s4777_s20 + $0x60] sm:$0xff] %v361_v12   ;;  %366 = vst [vmem:[%s4777_s20 + $0x68] sm:$0xff] %v365_v13   ;;  %v373_v15 = vld [vmem:[%s4772_s18 + $0x78] sm:$0xff]   ;;  %v377_v16 = vld [vmem:[%s4772_s18 + $0x80] sm:$0xff]  }
  0x5f   : > { %370 = vst [vmem:[%s4777_s20 + $0x70] sm:$0xff] %v369_v14   ;;  %v381_v17 = vld [vmem:[%s4772_s18 + $0x88] sm:$0xff]   ;;  %374 = vst [vmem:[%s4777_s20 + $0x78] sm:$0xff] %v373_v15   ;;  %v385_v18 = vld [vmem:[%s4772_s18 + $0x90] sm:$0xff]  }
  0x60   : > { %378 = vst [vmem:[%s4777_s20 + $0x80] sm:$0xff] %v377_v16   ;;  %382 = vst [vmem:[%s4777_s20 + $0x88] sm:$0xff] %v381_v17   ;;  %v389_v19 = vld [vmem:[%s4772_s18 + $0x98] sm:$0xff]   ;;  %v393_v20 = vld [vmem:[%s4772_s18 + $0xa0] sm:$0xff]  }
  0x61   : > { %386 = vst [vmem:[%s4777_s20 + $0x90] sm:$0xff] %v385_v18   ;;  %390 = vst [vmem:[%s4777_s20 + $0x98] sm:$0xff] %v389_v19   ;;  %v397_v21 = vld [vmem:[%s4772_s18 + $0xa8] sm:$0xff]   ;;  %v401_v22 = vld [vmem:[%s4772_s18 + $0xb0] sm:$0xff]  }
  0x62   : > { %394 = vst [vmem:[%s4777_s20 + $0xa0] sm:$0xff] %v393_v20   ;;  %v405_v23 = vld [vmem:[%s4772_s18 + $0xb8] sm:$0xff]   ;;  %398 = vst [vmem:[%s4777_s20 + $0xa8] sm:$0xff] %v397_v21   ;;  %v409_v24 = vld [vmem:[%s4772_s18 + $0x3c0] sm:$0xff]  }
  0x63   : > { %402 = vst [vmem:[%s4777_s20 + $0xb0] sm:$0xff] %v401_v22   ;;  %406 = vst [vmem:[%s4777_s20 + $0xb8] sm:$0xff] %v405_v23   ;;  %v413_v25 = vld [vmem:[%s4772_s18 + $0x3c8] sm:$0xff]   ;;  %v417_v26 = vld [vmem:[%s4772_s18 + $0x3d0] sm:$0xff]  }
  0x64   : > { %410 = vst [vmem:[%s4777_s20 + $0xc0] sm:$0xff] %v409_v24   ;;  %414 = vst [vmem:[%s4777_s20 + $0xc8] sm:$0xff] %v413_v25   ;;  %v421_v27 = vld [vmem:[%s4772_s18 + $0x3d8] sm:$0xff]   ;;  %v425_v28 = vld [vmem:[%s4772_s18 + $0x3e0] sm:$0xff]  }
  0x65   : > { %418 = vst [vmem:[%s4777_s20 + $0xd0] sm:$0xff] %v417_v26   ;;  %v429_v29 = vld [vmem:[%s4772_s18 + $0x3e8] sm:$0xff]   ;;  %422 = vst [vmem:[%s4777_s20 + $0xd8] sm:$0xff] %v421_v27   ;;  %v433_v30 = vld [vmem:[%s4772_s18 + $0x3f0] sm:$0xff]  }
  0x66   : > { %426 = vst [vmem:[%s4777_s20 + $0xe0] sm:$0xff] %v425_v28   ;;  %430 = vst [vmem:[%s4777_s20 + $0xe8] sm:$0xff] %v429_v29   ;;  %v437_v31 = vld [vmem:[%s4772_s18 + $0x3f8] sm:$0xff]   ;;  %v441_v32 = vld [vmem:[%s4772_s18 + $0x400] sm:$0xff]  }
  0x67   : > { %434 = vst [vmem:[%s4777_s20 + $0xf0] sm:$0xff] %v433_v30   ;;  %438 = vst [vmem:[%s4777_s20 + $0xf8] sm:$0xff] %v437_v31   ;;  %v445_v33 = vld [vmem:[%s4772_s18 + $0x408] sm:$0xff]   ;;  %v449_v34 = vld [vmem:[%s4772_s18 + $0x410] sm:$0xff]  }
  0x68   : > { %442 = vst [vmem:[%s4777_s20 + $0x100] sm:$0xff] %v441_v32   ;;  %v453_v35 = vld [vmem:[%s4772_s18 + $0x418] sm:$0xff]   ;;  %446 = vst [vmem:[%s4777_s20 + $0x108] sm:$0xff] %v445_v33   ;;  %v457_v36 = vld [vmem:[%s4772_s18 + $0x420] sm:$0xff]  }
  0x69   : > { %450 = vst [vmem:[%s4777_s20 + $0x110] sm:$0xff] %v449_v34   ;;  %454 = vst [vmem:[%s4777_s20 + $0x118] sm:$0xff] %v453_v35   ;;  %v461_v37 = vld [vmem:[%s4772_s18 + $0x428] sm:$0xff]   ;;  %v465_v38 = vld [vmem:[%s4772_s18 + $0x430] sm:$0xff]  }
  0x6a   : > { %458 = vst [vmem:[%s4777_s20 + $0x120] sm:$0xff] %v457_v36   ;;  %462 = vst [vmem:[%s4777_s20 + $0x128] sm:$0xff] %v461_v37   ;;  %v469_v39 = vld [vmem:[%s4772_s18 + $0x438] sm:$0xff]   ;;  %v473_v40 = vld [vmem:[%s4772_s18 + $0x440] sm:$0xff]  }
  0x6b   : > { %466 = vst [vmem:[%s4777_s20 + $0x130] sm:$0xff] %v465_v38   ;;  %v477_v41 = vld [vmem:[%s4772_s18 + $0x448] sm:$0xff]   ;;  %470 = vst [vmem:[%s4777_s20 + $0x138] sm:$0xff] %v469_v39   ;;  %v481_v42 = vld [vmem:[%s4772_s18 + $0x450] sm:$0xff]  }
  0x6c   : > { %474 = vst [vmem:[%s4777_s20 + $0x140] sm:$0xff] %v473_v40   ;;  %478 = vst [vmem:[%s4777_s20 + $0x148] sm:$0xff] %v477_v41   ;;  %v485_v43 = vld [vmem:[%s4772_s18 + $0x458] sm:$0xff]   ;;  %v489_v44 = vld [vmem:[%s4772_s18 + $0x460] sm:$0xff]  }
  0x6d   : > { %482 = vst [vmem:[%s4777_s20 + $0x150] sm:$0xff] %v481_v42   ;;  %486 = vst [vmem:[%s4777_s20 + $0x158] sm:$0xff] %v485_v43   ;;  %v493_v45 = vld [vmem:[%s4772_s18 + $0x468] sm:$0xff]   ;;  %v497_v46 = vld [vmem:[%s4772_s18 + $0x470] sm:$0xff]  }
  0x6e   : > { %490 = vst [vmem:[%s4777_s20 + $0x160] sm:$0xff] %v489_v44   ;;  %v501_v47 = vld [vmem:[%s4772_s18 + $0x478] sm:$0xff]   ;;  %494 = vst [vmem:[%s4777_s20 + $0x168] sm:$0xff] %v493_v45  }
  0x6f   : > { %498 = vst [vmem:[%s4777_s20 + $0x170] sm:$0xff] %v497_v46   ;;  %502 = vst [vmem:[%s4777_s20 + $0x178] sm:$0xff] %v501_v47  }
  0x70 PF: > { %s721_s16 = sand.u32 1, %s4589_s26   ;;  %s3969_s21 = smul.u32 12288, %s4597_s28 }
  0x71   : > { %s4091_s17 = smul.u32 768, %s721_s16  ;;  %s722_s19 = scalar_lea.sflag [#allocation5], %s721_s16 }
  0x72   : > { %s732_s23 = scalar_lea.hbm %s5595_s1, %s3969_s21  ;;  %s4609_s18 = smov [#allocation4]  }
  0x73   : > { %s725_s24 = scalar_lea.vmem [#allocation4], %s4091_s17  ;;  %s4505_s20 = sshll.u32 %s4609_s18, 4  ;;  %s4506_s20 = int_to_ptr.vmem [resolvable:$false] %s4505_s20 }
  0x74   : > { %s733_s11 = sshll.u32 %s725_s24, 4  ;;  %s4507_s0 = scalar_lea.vmem %s4506_s20, 24576  ;;  %s734_s11 = int_to_ptr.vmem [resolvable:$true] %s733_s11 }
  0x75   : > { %s4501_s30 = scalar_lea.vmem %s734_s11, 12288  ;;  %p4508_p11 = scmp.lt.s32.totalorder %s734_s11, %s4506_s20 }
  0x76   : > { %p4502_p12 = scmp.ne.s32.totalorder %s734_s11, %s4501_s30  ;;  %p4509_p0 = scmp.lt.s32.totalorder %s4507_s0, %s4501_s30 }
  0x78   : > { %p4503_p13 = pnand %p4502_p12, %p4694_p3  ;;  %p4510_p8 = por %p4509_p0, %p4508_p11 }
  0x7a   : > { %p4504_p9 = pneg %p4503_p13 }
  0x7c   : > { %p4511_p10 = pnand %p4510_p8, %p4504_p9 }
  0x7e   : > { %4514 = shalt.err (!%p4511_p10)
}
  0x7f   : > { %s4610_s9 = smov 256   ;;  %s4611_s21 = smov 16  }
  0x80   : > { %4102 = dma.hbm_to_vmem [thread:$0]  (%p4694_p3), %s732_s23, 12288, %s734_s11, %s722_s19, %s4610_s9, %s4610_s9, %s4611_s21  }
  0x81 PF: > { %p5614_p1 = scmp.ne.s32.totalorder %s5611_s15, 0 }
  0x82   : > { %s748_s16 = sand.u32 (!%p5614_p1), 1, %s4585_s25   ;;  %p5615_p4 = scmp.ne.s32.totalorder (!%p5614_p1), %s5610_s13, 0 }
  0x83   : > { %745 = sbr.rel (%p5614_p1) target bundleno = 1188 (0x4a4), region = 85  ;;  %s755_s0 = scalar_lea.sflag (!%p5614_p1), [#allocation5], %s748_s16 }
  0x84   : > { %s4092_s17 = smul.u32 (!%p5614_p1), 384, %s748_s16 }
  0x85   : > { %s4093_s22 = smul.u32 (!%p5614_p1), 768, %s748_s16 }
  0x86   : > { %s4884_s24 = scalar_lea.vmem (!%p5614_p1), [#allocation3], %s4092_s17 }
  0x87   : > { %s4886_s30 = scalar_lea.vmem (!%p5614_p1), [#allocation4], %s4093_s22 }
  0x88   : > { %4564 = dma.done.wait (%p5615_p4), %s755_s0, 12288  }
  0x89   : > { %4566 = vsyncadd (%p5615_p4), %s755_s0, 4294955008  ;;  %p5616_p3 = scmp.ne.s32.totalorder %s5609_s12, 0 }
  0x8b   : > { %4568 = dma.done.wait (%p5616_p3), [#allocation8], 4160  }
  0x8c   : > { %4570 = vsyncadd (%p5616_p3), [#allocation8], 4294963136 }
  0x8d   : > { %4572 = dma.done.wait (%p5616_p3), [#allocation11], 32  }
  0x8e   : > { %4574 = vsyncadd (%p5616_p3), [#allocation11], 4294967264  ;;  %p3630_p2 = scmp.ne.s32.totalorder %s4593_s27, 0 }
  0x90   : > { %811 = sbr.rel (%p3630_p2) target bundleno = 151 (0x97), region = 113 }
  0x95   : > { %v4612_v48 = vmov 0.0  }
  0x96   : > { %812 = vst [vmem:[#allocation2] sm:$0xff] %v4612_v48 }
  0x97 PF: > { %v4009_v49 = vld [vmem:[%s4884_s24 + $0x140] sm:$0xff]   ;;  %v3986_v51 = vld [vmem:[%s4884_s24 + $0x88] sm:$0xff]   ;;  %vm1101_vm0 = vcmask 400384   ;;  %v3987_v7 = vld [vmem:[%s4884_s24 + $0x90] sm:$0xff]   ;;  %vm1786_vm1 = vcmask 130112   ;;  %vm1793_vm2 = vcmask 195712  }
  0x98   : > { %v3985_v50 = vld [vmem:[%s4884_s24 + $0x80] sm:$0xff]   ;;  %v3939_v52 = vunpack.c.l.bf16 %v4009_v49  ;;  %v3940_v54 = vunpack.c.h.bf16 %v4009_v49  ;;  %v3848_v56 = vunpack.c.h.bf16 %v3986_v51  ;;  %v3847_v57 = vunpack.c.l.bf16 %v3986_v51  ;;  %v4010_v62 = vld [vmem:[%s4884_s24 + $0x148] sm:$0xff]   ;;  %v4011_v14 = vld [vmem:[%s4884_s24 + $0x150] sm:$0xff]   ;;  %p3727_p6 = scmp.ne.s32.totalorder %s4593_s27, 4 }
  0x99   : > { %v3843_v53 = vunpack.c.l.bf16 %v3985_v50  ;;  %v3844_v55 = vunpack.c.h.bf16 %v3985_v50  ;;  %v3944_v1 = vunpack.c.h.bf16 %v4010_v62  ;;  %v3943_v2 = vunpack.c.l.bf16 %v4010_v62  ;;  %v3988_v21 = vld [vmem:[%s4884_s24 + $0x98] sm:$0xff]   ;;  %v3989_v35 = vld [vmem:[%s4884_s24 + $0xa0] sm:$0xff]   ;;  %v3990_v45 = vld [vmem:[%s4884_s24 + $0xa8] sm:$0xff]  }
  0x9a   : > { %v1085_v58 = vmax.f32 %v3939_v52, 0.0  ;;  %v1086_v60 = vmax.f32 %v3940_v54, 0.0  ;;  %v1040_v5 = vmax.f32 %v3848_v56, 0.0  ;;  %v1039_v6 = vmax.f32 %v3847_v57, 0.0  ;;  %v4012_v24 = vld [vmem:[%s4884_s24 + $0x158] sm:$0xff]   ;;  %v4013_v42 = vld [vmem:[%s4884_s24 + $0x160] sm:$0xff]  }
  0x9b   : > { %v1037_v59 = vmax.f32 %v3843_v53, 0.0  ;;  %v1038_v61 = vmax.f32 %v3844_v55, 0.0  ;;  %v1088_v8 = vmax.f32 %v3944_v1, 0.0  ;;  %v1087_v9 = vmax.f32 %v3943_v2, 0.0  ;;  %v4014_v52 = vld [vmem:[%s4884_s24 + $0x168] sm:$0xff]   ;;  %v4015_v2 = vld [vmem:[%s4884_s24 + $0x170] sm:$0xff]  }
  0x9c   : > { %v1342_v63 = vsel %vm1101_vm0, %v1085_v58, 0.0  ;;  %v1345_v3 = vsel %vm1101_vm0, %v1086_v60, 0.0  ;;  %v1207_v10 = vsel %vm1101_vm0, %v1040_v5, 0.0  ;;  %v1204_v11 = vsel %vm1101_vm0, %v1039_v6, 0.0 }
  0x9d   : > { %v1198_v0 = vsel %vm1101_vm0, %v1037_v59, 0.0  ;;  %1343 = vadd.xlane.f32.xlu1 %v1342_v63  ;;  %v1201_v4 = vsel %vm1101_vm0, %v1038_v61, 0.0  ;;  %v3852_v12 = vunpack.c.h.bf16 %v3987_v7  ;;  %v3851_v13 = vunpack.c.l.bf16 %v3987_v7  ;;  %v3991_v63 = vld [vmem:[%s4884_s24 + $0xb0] sm:$0xff]  }
  0x9e   : > { %1199 = vadd.xlane.f32.xlu0 %v1198_v0  ;;  %v1351_v15 = vsel %vm1101_vm0, %v1088_v8, 0.0  ;;  %v3948_v16 = vunpack.c.h.bf16 %v4011_v14  ;;  %v1348_v17 = vsel %vm1101_vm0, %v1087_v9, 0.0  ;;  %v3947_v20 = vunpack.c.l.bf16 %v4011_v14  ;;  %v4016_v14 = vld [vmem:[%s4884_s24 + $0x178] sm:$0xff]  }
  0x9f   : > { %v1042_v18 = vmax.f32 %v3852_v12, 0.0  ;;  %v1041_v19 = vmax.f32 %v3851_v13, 0.0  ;;  %v3856_v23 = vunpack.c.h.bf16 %v3988_v21  ;;  %v3855_v28 = vunpack.c.l.bf16 %v3988_v21  ;;  %v3992_v13 = vld [vmem:[%s4884_s24 + $0xb8] sm:$0xff]  }
  0xa0   : > { %v1090_v22 = vmax.f32 %v3948_v16, 0.0  ;;  %v1089_v27 = vmax.f32 %v3947_v20, 0.0  ;;  %v3952_v29 = vunpack.c.h.bf16 %v4012_v24  ;;  %v3951_v30 = vunpack.c.l.bf16 %v4012_v24  ;;  %v3977_v24 = vld [vmem:[%s4884_s24 + $0x40] sm:$0xff]  }
  0xa1   : > { %1346 = vadd.xlane.f32.xlu1 %v1345_v3  ;;  %v1213_v25 = vsel %vm1101_vm0, %v1042_v18, 0.0  ;;  %v1210_v26 = vsel %vm1101_vm0, %v1041_v19, 0.0  ;;  %v1044_v33 = vmax.f32 %v3856_v23, 0.0  ;;  %v1043_v34 = vmax.f32 %v3855_v28, 0.0  ;;  %v4201_v28 = vld [vmem:[%s4886_s30 + $0x2e4] ss:$16 sps:$4 sm:$0xff]  }
  0xa2   : > { %1202 = vadd.xlane.f32.xlu0 %v1201_v4  ;;  %v1357_v31 = vsel %vm1101_vm0, %v1090_v22, 0.0  ;;  %v1354_v32 = vsel %vm1101_vm0, %v1089_v27, 0.0  ;;  %v1092_v36 = vmax.f32 %v3952_v29, 0.0  ;;  %v1091_v37 = vmax.f32 %v3951_v30, 0.0  ;;  %v4203_v29 = vld [vmem:[%s4886_s30 + $0x2e0] ss:$16 sps:$4 sm:$0xff]   ;;  %2812 = vmatprep.subr.bf16.mxu1 %v4201_v28 }
  0xa3   : > { %v1219_v38 = vsel %vm1101_vm0, %v1044_v33, 0.0  ;;  %v1216_v39 = vsel %vm1101_vm0, %v1043_v34, 0.0  ;;  %v3860_v40 = vunpack.c.h.bf16 %v3989_v35  ;;  %v3859_v41 = vunpack.c.l.bf16 %v3989_v35  ;;  %2813 = vmatpush1.bf16.msra.mxu1 %v4203_v29  ;;  %v4224_v28 = vld [vmem:[%s4886_s30 + $0x200] ss:$16 sps:$4 sm:$0xff]  }
  0xa4   : > { %v1363_v43 = vsel %vm1101_vm0, %v1092_v36, 0.0  ;;  %v1360_v44 = vsel %vm1101_vm0, %v1091_v37, 0.0  ;;  %v3956_v48 = vunpack.c.h.bf16 %v4013_v42  ;;  %v3955_v49 = vunpack.c.l.bf16 %v4013_v42  ;;  %v4001_v36 = vld [vmem:[%s4884_s24 + $0x100] sm:$0xff]  }
  0xa5   : > { %1208 = vadd.xlane.f32.xlu1 %v1207_v10  ;;  %v1046_v46 = vmax.f32 %v3860_v40, 0.0  ;;  %v1045_v47 = vmax.f32 %v3859_v41, 0.0  ;;  %v3864_v50 = vunpack.c.h.bf16 %v3990_v45  ;;  %v3863_v51 = vunpack.c.l.bf16 %v3990_v45  ;;  %v4204_v37 = vld [vmem:[%s4886_s30 + $0x2c4] ss:$16 sps:$4 sm:$0xff]  }
  0xa6   : > { %1205 = vadd.xlane.f32.xlu0 %v1204_v11  ;;  %v1094_v55 = vmax.f32 %v3956_v48, 0.0  ;;  %v1093_v56 = vmax.f32 %v3955_v49, 0.0  ;;  %v3960_v57 = vunpack.c.h.bf16 %v4014_v52  ;;  %v3959_v58 = vunpack.c.l.bf16 %v4014_v52  ;;  %v3778_v45 = vld [vmem:[%s4884_s24] sm:$0xff]   ;;  %2814 = vmatprep.subr.bf16.mxu1 %v4204_v37 }
  0xa7   : > { %v1225_v53 = vsel %vm1101_vm0, %v1046_v46, 0.0  ;;  %v1222_v54 = vsel %vm1101_vm0, %v1045_v47, 0.0  ;;  %v1048_v61 = vmax.f32 %v3864_v50, 0.0  ;;  %v1047_v62 = vmax.f32 %v3863_v51, 0.0  ;;  %v4207_v46 = vld [vmem:[%s4886_s30 + $0x2a4] ss:$16 sps:$4 sm:$0xff]  }
  0xa8   : > { %v1369_v59 = vsel %vm1101_vm0, %v1094_v55, 0.0  ;;  %v1366_v60 = vsel %vm1101_vm0, %v1093_v56, 0.0  ;;  %v1096_v0 = vmax.f32 %v3960_v57, 0.0  ;;  %v1095_v1 = vmax.f32 %v3959_v58, 0.0  ;;  %v4209_v47 = vld [vmem:[%s4886_s30 + $0x2a0] ss:$16 sps:$4 sm:$0xff]  }
  0xa9   : > { %1352 = vadd.xlane.f32.xlu1 %v1351_v15  ;;  %v1231_v3 = vsel %vm1101_vm0, %v1048_v61, 0.0  ;;  %v1228_v4 = vsel %vm1101_vm0, %v1047_v62, 0.0  ;;  %v3868_v5 = vunpack.c.h.bf16 %v3991_v63  ;;  %v3867_v6 = vunpack.c.l.bf16 %v3991_v63  ;;  %v4210_v55 = vld [vmem:[%s4886_s30 + $0x284] ss:$16 sps:$4 sm:$0xff]   ;;  %v4212_v56 = vld [vmem:[%s4886_s30 + $0x280] ss:$16 sps:$4 sm:$0xff]  }
  0xaa   : > { %1349 = vadd.xlane.f32.xlu0 %v1348_v17  ;;  %v1375_v7 = vsel %vm1101_vm0, %v1096_v0, 0.0  ;;  %v1372_v8 = vsel %vm1101_vm0, %v1095_v1, 0.0  ;;  %v3964_v11 = vunpack.c.h.bf16 %v4015_v2  ;;  %v3963_v12 = vunpack.c.l.bf16 %v4015_v2  ;;  %v3993_v63 = vld [vmem:[%s4884_s24 + $0xc0] sm:$0xff]  }
  0xab   : > { %v1050_v9 = vmax.f32 %v3868_v5, 0.0  ;;  %v1049_v10 = vmax.f32 %v3867_v6, 0.0  ;;  %v3872_v15 = vunpack.c.h.bf16 %v3992_v13  ;;  %v3871_v16 = vunpack.c.l.bf16 %v3992_v13  ;;  %v4213_v0 = vld [vmem:[%s4886_s30 + $0x264] ss:$16 sps:$4 sm:$0xff]   ;;  %v4215_v1 = vld [vmem:[%s4886_s30 + $0x260] ss:$16 sps:$4 sm:$0xff]  }
  0xac   : > { %v1098_v19 = vmax.f32 %v3964_v11, 0.0  ;;  %v1097_v20 = vmax.f32 %v3963_v12, 0.0  ;;  %v3968_v22 = vunpack.c.h.bf16 %v4016_v14  ;;  %v3967_v23 = vunpack.c.l.bf16 %v4016_v14 }
  0xad   : > { %1214 = vadd.xlane.f32.xlu1 %v1213_v25  ;;  %v1237_v17 = vsel %vm1101_vm0, %v1050_v9, 0.0  ;;  %v1234_v18 = vsel %vm1101_vm0, %v1049_v10, 0.0  ;;  %v1052_v21 = vmax.f32 %v3872_v15, 0.0  ;;  %v1051_v27 = vmax.f32 %v3871_v16, 0.0  ;;  %v4216_v9 = vld [vmem:[%s4886_s30 + $0x244] ss:$16 sps:$4 sm:$0xff]  }
  0xae   : > { %1211 = vadd.xlane.f32.xlu0 %v1210_v26  ;;  %v1381_v25 = vsel %vm1101_vm0, %v1098_v19, 0.0  ;;  %v1378_v26 = vsel %vm1101_vm0, %v1097_v20, 0.0  ;;  %v1100_v30 = vmax.f32 %v3968_v22, 0.0  ;;  %v3812_v34 = vunpack.c.h.bf16 %v3977_v24  ;;  %v4218_v10 = vld [vmem:[%s4886_s30 + $0x240] ss:$16 sps:$4 sm:$0xff]  }
  0xaf   : > { %v1240_v33 = vsel %vm1101_vm0, %v1051_v27, 0.0  ;;  %v3811_v35 = vunpack.c.l.bf16 %v3977_v24  ;;  %v3780_v48 = vunpack.c.h.bf16 %v3778_v45  ;;  %v3779_v49 = vunpack.c.l.bf16 %v3778_v45  ;;  %v4221_v19 = vld [vmem:[%s4886_s30 + $0x220] ss:$16 sps:$4 sm:$0xff]   ;;  %v4222_v27 = vld [vmem:[%s4886_s30 + $0x204] ss:$16 sps:$4 sm:$0xff]  }
  0xb0   : > { %v1022_v41 = vmax.f32 %v3812_v34, 0.0  ;;  %v3876_v6 = vunpack.c.h.bf16 %v3993_v63  ;;  %vm1800_vm3 = vcmask 261312   ;;  %vm1807_vm4 = vcmask 326912  }
  0xb1   : > { %1358 = vadd.xlane.f32.xlu1 %v1357_v31  ;;  %v1099_v31 = vmax.f32 %v3967_v23, 0.0  ;;  %v1021_v42 = vmax.f32 %v3811_v35, 0.0  ;;  %v1006_v61 = vmax.f32 %v3780_v48, 0.0  ;;  %v1005_v62 = vmax.f32 %v3779_v49, 0.0  ;;  %v3979_v35 = vld [vmem:[%s4884_s24 + $0x50] sm:$0xff]  }
  0xb2   : > { %1355 = vadd.xlane.f32.xlu0 %v1354_v32  ;;  %v1243_v32 = vsel %vm1101_vm0, %v1052_v21, 0.0  ;;  %v1153_v50 = vsel %vm1101_vm0, %v1022_v41, 0.0  ;;  %v1054_v13 = vmax.f32 %v3876_v6, 0.0  ;;  %v3820_v41 = vunpack.c.h.bf16 %v3979_v35 }
  0xb3   : > { %v1384_v40 = vsel %vm1101_vm0, %v1099_v31, 0.0  ;;  %v1150_v51 = vsel %vm1101_vm0, %v1021_v42, 0.0  ;;  %v1102_v5 = vsel %vm1101_vm0, %v1005_v62, 0.0  ;;  %v3819_v42 = vunpack.c.l.bf16 %v3979_v35  ;;  %v4005_v35 = vld [vmem:[%s4884_s24 + $0x120] sm:$0xff]  }
  0xb4   : > { %v1249_v22 = vsel %vm1101_vm0, %v1054_v13, 0.0  ;;  %vm1814_vm5 = vcmask 392512   ;;  %vm1821_vm6 = vcmask 458112   ;;  %vm1828_vm7 = vcmask 523712  }
  0xb5   : > { %1220 = vadd.xlane.f32.xlu1 %v1219_v38  ;;  %v4206_v38 = vld [vmem:[%s4886_s30 + $0x2c0] ss:$16 sps:$4 sm:$0xff]   ;;  %vm1835_vm8 = vcmask 589312   ;;  %vm1842_vm9 = vcmask 654912   ;;  %vm1849_vm10 = vcmask 720512   ;;  %vm1856_vm11 = vcmask 786112  }
  0xb6   : > { %1217 = vadd.xlane.f32.xlu0 %v1216_v39  ;;  %v1387_v39 = vsel %vm1101_vm0, %v1100_v30, 0.0  ;;  %2815 = vmatpush1.bf16.msra.mxu1 %v4206_v38  ;;  %vm1863_vm12 = vcmask 851712   ;;  %vm1870_vm13 = vcmask 917312   ;;  %vm1877_vm14 = vcmask 982912  }
  0xb7   : > { %2816 = vmatprep.subr.bf16.mxu1 %v4207_v46  ;;  %v1026_v46 = vmax.f32 %v3820_v41, 0.0  ;;  %v3924_v41 = vunpack.c.h.bf16 %v4005_v35  ;;  %vm1884_vm15 = vcmask 1048512  }
  0xb9   : > { %1364 = vadd.xlane.f32.xlu1 %v1363_v43  ;;  %v3908_v43 = vunpack.c.h.bf16 %v4001_v36 }
  0xba   : > { %1361 = vadd.xlane.f32.xlu0 %v1360_v44  ;;  %v3907_v44 = vunpack.c.l.bf16 %v4001_v36  ;;  %2817 = vmatpush1.bf16.msra.mxu1 %v4209_v47  ;;  %v4613_v36 = vmov 0   ;;  %v1025_v47 = vmax.f32 %v3819_v42, 0.0  ;;  %v3923_v42 = vunpack.c.l.bf16 %v4005_v35 }
  0xbb   : > { %v1070_v52 = vmax.f32 %v3908_v43, 0.0  ;;  %2818 = vmatprep.subr.bf16.mxu1 %v4210_v55  ;;  %2844 = vmatprep.mubr.bf16.mxu1 %v4613_v36  ;;  %v4003_v43 = vld [vmem:[%s4884_s24 + $0x110] sm:$0xff]  }
  0xbc   : > { %v3916_v48 = vunpack.c.h.bf16 %v4003_v43  ;;  %v3915_v49 = vunpack.c.l.bf16 %v4003_v43  ;;  %v3973_v43 = vld [vmem:[%s4884_s24 + $0x20] sm:$0xff]  }
  0xbd   : > { %1226 = vadd.xlane.f32.xlu1 %v1225_v53  ;;  %v1069_v53 = vmax.f32 %v3907_v44, 0.0 }
  0xbe   : > { %1223 = vadd.xlane.f32.xlu0 %v1222_v54  ;;  %v3978_v54 = vld [vmem:[%s4884_s24 + $0x48] sm:$0xff]   ;;  %2819 = vmatpush1.bf16.msra.mxu1 %v4212_v56  ;;  %v1074_v55 = vmax.f32 %v3916_v48, 0.0  ;;  %v1073_v56 = vmax.f32 %v3915_v49, 0.0  ;;  %v1078_v48 = vmax.f32 %v3924_v41, 0.0  ;;  %v1077_v49 = vmax.f32 %v3923_v42, 0.0  ;;  %v3975_v41 = vld [vmem:[%s4884_s24 + $0x30] sm:$0xff]  }
  0xbf   : > { %v3816_v57 = vunpack.c.h.bf16 %v3978_v54  ;;  %v3815_v58 = vunpack.c.l.bf16 %v3978_v54  ;;  %2820 = vmatprep.subr.bf16.mxu1 %v4213_v0  ;;  %v1162_v54 = vsel %vm1101_vm0, %v1025_v47, 0.0  ;;  %v3980_v0 = vld [vmem:[%s4884_s24 + $0x58] sm:$0xff]  }
  0xc0   : > { %v3823_v6 = vunpack.c.l.bf16 %v3980_v0  ;;  %v4230_v42 = vld [vmem:[%s4886_s30 + $0xec] ss:$16 sps:$4 sm:$0xff]  }
  0xc1   : > { %1370 = vadd.xlane.f32.xlu1 %v1369_v59  ;;  %v1297_v59 = vsel %vm1101_vm0, %v1070_v52, 0.0  ;;  %v1024_v2 = vmax.f32 %v3816_v57, 0.0  ;;  %v3995_v57 = vld [vmem:[%s4884_s24 + $0xd0] sm:$0xff]  }
  0xc2   : > { %1367 = vadd.xlane.f32.xlu0 %v1366_v60  ;;  %v1294_v60 = vsel %vm1101_vm0, %v1069_v53, 0.0  ;;  %2821 = vmatpush1.bf16.msra.mxu1 %v4215_v1  ;;  %v1165_v53 = vsel %vm1101_vm0, %v1026_v46, 0.0 }
  0xc3   : > { %v1159_v11 = vsel %vm1101_vm0, %v1024_v2, 0.0  ;;  %2822 = vmatprep.subr.bf16.mxu1 %v4216_v9 }
  0xc5   : > { %1232 = vadd.xlane.f32.xlu1 %v1231_v3  ;;  %v1023_v3 = vmax.f32 %v3815_v58, 0.0  ;;  %v3884_v58 = vunpack.c.h.bf16 %v3995_v57 }
  0xc6   : > { %1229 = vadd.xlane.f32.xlu0 %v1228_v4  ;;  %v1105_v4 = vsel %vm1101_vm0, %v1006_v61, 0.0  ;;  %2823 = vmatpush1.bf16.msra.mxu1 %v4218_v10  ;;  %v1306_v61 = vsel %vm1101_vm0, %v1073_v56, 0.0 }
  0xc7   : > { %v1156_v12 = vsel %vm1101_vm0, %v1023_v3, 0.0  ;;  %v1058_v1 = vmax.f32 %v3884_v58, 0.0 }
  0xc9   : > { %1376 = vadd.xlane.f32.xlu1 %v1375_v7  ;;  %v3875_v7 = vunpack.c.l.bf16 %v3993_v63 }
  0xca   : > { %1373 = vadd.xlane.f32.xlu0 %v1372_v8  ;;  %v4002_v8 = vld [vmem:[%s4884_s24 + $0x108] sm:$0xff]  }
  0xcb   : > { %v1053_v14 = vmax.f32 %v3875_v7, 0.0  ;;  %v3912_v15 = vunpack.c.h.bf16 %v4002_v8  ;;  %v3911_v16 = vunpack.c.l.bf16 %v4002_v8  ;;  %v4004_v7 = vld [vmem:[%s4884_s24 + $0x118] sm:$0xff]   ;;  %v1261_v8 = vsel %vm1101_vm0, %v1058_v1, 0.0 }
  0xcc   : > { %v3919_v13 = vunpack.c.l.bf16 %v4004_v7 }
  0xcd   : > { %1238 = vadd.xlane.f32.xlu1 %v1237_v17  ;;  %v3970_v17 = vld [vmem:[%s4884_s24 + $0x8] sm:$0xff]   ;;  %v1246_v23 = vsel %vm1101_vm0, %v1053_v14, 0.0  ;;  %v1072_v24 = vmax.f32 %v3912_v15, 0.0  ;;  %v3972_v14 = vld [vmem:[%s4884_s24 + $0x18] sm:$0xff]  }
  0xce   : > { %1235 = vadd.xlane.f32.xlu0 %v1234_v18  ;;  %v4219_v18 = vld [vmem:[%s4886_s30 + $0x224] ss:$16 sps:$4 sm:$0xff]   ;;  %v3784_v20 = vunpack.c.h.bf16 %v3970_v17  ;;  %v3783_v21 = vunpack.c.l.bf16 %v3970_v17  ;;  %v3792_v15 = vunpack.c.h.bf16 %v3972_v14 }
  0xcf   : > { %2824 = vmatprep.subr.bf16.mxu1 %v4219_v18  ;;  %v1303_v31 = vsel %vm1101_vm0, %v1072_v24, 0.0 }
  0xd0   : > { %2825 = vmatpush1.bf16.msra.mxu1 %v4221_v19  ;;  %v1007_v34 = vmax.f32 %v3783_v21, 0.0  ;;  %v3996_v21 = vld [vmem:[%s4884_s24 + $0xd8] sm:$0xff]  }
  0xd1   : > { %1382 = vadd.xlane.f32.xlu1 %v1381_v25  ;;  %v1071_v25 = vmax.f32 %v3911_v16, 0.0  ;;  %2826 = vmatprep.subr.bf16.mxu1 %v4222_v27  ;;  %v3791_v16 = vunpack.c.l.bf16 %v3972_v14 }
  0xd2   : > { %1379 = vadd.xlane.f32.xlu0 %v1378_v26  ;;  %v3994_v26 = vld [vmem:[%s4884_s24 + $0xc8] sm:$0xff]  }
  0xd3   : > { %v3880_v29 = vunpack.c.h.bf16 %v3994_v26  ;;  %v3879_v30 = vunpack.c.l.bf16 %v3994_v26  ;;  %v1012_v26 = vmax.f32 %v3792_v15, 0.0  ;;  %v1011_v27 = vmax.f32 %v3791_v16, 0.0 }
  0xd4   : > { %2827 = vmatpush1.bf16.msra.mxu1 %v4224_v28  ;;  %v3981_v28 = vld [vmem:[%s4884_s24 + $0x60] sm:$0xff]  }
  0xd5   : > { %1244 = vadd.xlane.f32.xlu1 %v1243_v32  ;;  %v1300_v32 = vsel %vm1101_vm0, %v1071_v25, 0.0  ;;  %v1056_v37 = vmax.f32 %v3880_v29, 0.0  ;;  %v1055_v38 = vmax.f32 %v3879_v30, 0.0  ;;  %2853 = vmatprep.subr.bf16.mxu1 %v4230_v42 }
  0xd6   : > { %1241 = vadd.xlane.f32.xlu0 %v1240_v33  ;;  %v1008_v33 = vmax.f32 %v3784_v20, 0.0  ;;  %v1075_v20 = vmax.f32 %v3919_v13, 0.0 }
  0xd7   : > { %v1255_v44 = vsel %vm1101_vm0, %v1056_v37, 0.0  ;;  %v1252_v45 = vsel %vm1101_vm0, %v1055_v38, 0.0 }
  0xd8   : > { %v1312_v25 = vsel %vm1101_vm0, %v1075_v20, 0.0 }
  0xd9   : > { %1388 = vadd.xlane.f32.xlu1 %v1387_v39  ;;  %v1111_v39 = vsel %vm1101_vm0, %v1008_v33, 0.0  ;;  %v3828_v33 = vunpack.c.h.bf16 %v3981_v28 }
  0xda   : > { %1385 = vadd.xlane.f32.xlu0 %v1384_v40  ;;  %v1108_v40 = vsel %vm1101_vm0, %v1007_v34, 0.0  ;;  %v3827_v34 = vunpack.c.l.bf16 %v3981_v28  ;;  %v4007_v28 = vld [vmem:[%s4884_s24 + $0x130] sm:$0xff]  }
  0xdd   : > { %1154 = vadd.xlane.f32.xlu1 %v1153_v50  ;;  %v3971_v50 = vld [vmem:[%s4884_s24 + $0x10] sm:$0xff]  }
  0xde   : > { %1151 = vadd.xlane.f32.xlu0 %v1150_v51  ;;  %v3788_v51 = vunpack.c.h.bf16 %v3971_v50  ;;  %v3787_v52 = vunpack.c.l.bf16 %v3971_v50  ;;  %v3997_v50 = vld [vmem:[%s4884_s24 + $0xe0] sm:$0xff]  }
  0xe0   : > { %v1010_v62 = vmax.f32 %v3788_v51, 0.0  ;;  %v1009_v63 = vmax.f32 %v3787_v52, 0.0  ;;  %v3892_v51 = vunpack.c.h.bf16 %v3997_v50  ;;  %v3891_v52 = vunpack.c.l.bf16 %v3997_v50 }
  0xe1   : > { %1298 = vadd.xlane.f32.xlu1 %v1297_v59  ;;  %v3883_v59 = vunpack.c.l.bf16 %v3995_v57  ;;  %v3982_v57 = vld [vmem:[%s4884_s24 + $0x68] sm:$0xff]  }
  0xe2   : > { %1295 = vadd.xlane.f32.xlu0 %v1294_v60  ;;  %v1309_v60 = vsel %vm1101_vm0, %v1074_v55, 0.0  ;;  %v1117_v3 = vsel %vm1101_vm0, %v1010_v62, 0.0  ;;  %v1062_v58 = vmax.f32 %v3892_v51, 0.0  ;;  %v3832_v62 = vunpack.c.h.bf16 %v3982_v57 }
  0xe3   : > { %v1057_v2 = vmax.f32 %v3883_v59, 0.0  ;;  %v1061_v59 = vmax.f32 %v3891_v52, 0.0 }
  0xe4   : > { %v1273_v1 = vsel %vm1101_vm0, %v1062_v58, 0.0  ;;  %v4233_v58 = vld [vmem:[%s4886_s30 + $0xc0] ss:$16 sps:$4 sm:$0xff]  }
  0xe5   : > { %1106 = vadd.xlane.f32.xlu1 %v1105_v4  ;;  %v1114_v4 = vsel %vm1101_vm0, %v1009_v63, 0.0  ;;  %v1258_v9 = vsel %vm1101_vm0, %v1057_v2, 0.0  ;;  %v3831_v63 = vunpack.c.l.bf16 %v3982_v57  ;;  %v3804_v57 = vunpack.c.h.bf16 %v3975_v41 }
  0xe6   : > { %1103 = vadd.xlane.f32.xlu0 %v1102_v5  ;;  %v3824_v5 = vunpack.c.h.bf16 %v3980_v0  ;;  %v4006_v0 = vld [vmem:[%s4884_s24 + $0x128] sm:$0xff]  }
  0xe7   : > { %v3928_v2 = vunpack.c.h.bf16 %v4006_v0 }
  0xe8   : > { %v1028_v10 = vmax.f32 %v3824_v5, 0.0  ;;  %v1270_v5 = vsel %vm1101_vm0, %v1061_v59, 0.0 }
  0xe9   : > { %1160 = vadd.xlane.f32.xlu1 %v1159_v11  ;;  %v1027_v11 = vmax.f32 %v3823_v6, 0.0  ;;  %v1032_v6 = vmax.f32 %v3832_v62, 0.0  ;;  %v3803_v62 = vunpack.c.l.bf16 %v3975_v41 }
  0xea   : > { %1157 = vadd.xlane.f32.xlu0 %v1156_v12  ;;  %v3920_v12 = vunpack.c.h.bf16 %v4004_v7  ;;  %v1171_v17 = vsel %vm1101_vm0, %v1028_v10, 0.0  ;;  %v1031_v7 = vmax.f32 %v3831_v63, 0.0  ;;  %v1775_v10 = vlaneseq }
  0xeb   : > { %v1168_v18 = vsel %vm1101_vm0, %v1027_v11, 0.0  ;;  %v1080_v11 = vmax.f32 %v3928_v2, 0.0  ;;  %v1183_v14 = vsel %vm1101_vm0, %v1032_v6, 0.0 }
  0xec   : > { %v1076_v19 = vmax.f32 %v3920_v12, 0.0  ;;  %v1180_v15 = vsel %vm1101_vm0, %v1031_v7, 0.0  ;;  %v5040_v20 = vand.u32 127, %v1775_v10  ;;  %v3999_v7 = vld [vmem:[%s4884_s24 + $0xf0] sm:$0xff]  }
  0xed   : > { %1250 = vadd.xlane.f32.xlu1 %v1249_v22  ;;  %v3888_v22 = vunpack.c.h.bf16 %v3996_v21 }
  0xee   : > { %1247 = vadd.xlane.f32.xlu0 %v1246_v23  ;;  %v3887_v23 = vunpack.c.l.bf16 %v3996_v21  ;;  %v1315_v24 = vsel %vm1101_vm0, %v1076_v19, 0.0  ;;  %v3998_v19 = vld [vmem:[%s4884_s24 + $0xe8] sm:$0xff]   ;;  %v3983_v21 = vld [vmem:[%s4884_s24 + $0x70] sm:$0xff]   ;;  %v1781_v35 = vadd.s32 4294967288, %v5040_v20  ;;  %v1816_v6 = vadd.s32 4294967248, %v5040_v20 }
  0xef   : > { %v1060_v29 = vmax.f32 %v3888_v22, 0.0 }
  0xf0   : > { %v1059_v30 = vmax.f32 %v3887_v23, 0.0 }
  0xf1   : > { %1304 = vadd.xlane.f32.xlu1 %v1303_v31  ;;  %v1123_v31 = vsel %vm1101_vm0, %v1012_v26, 0.0  ;;  %v1267_v37 = vsel %vm1101_vm0, %v1060_v29, 0.0 }
  0xf2   : > { %1301 = vadd.xlane.f32.xlu0 %v1300_v32  ;;  %v1120_v32 = vsel %vm1101_vm0, %v1011_v27, 0.0  ;;  %v1264_v38 = vsel %vm1101_vm0, %v1059_v30, 0.0  ;;  %v3896_v27 = vunpack.c.h.bf16 %v3998_v19  ;;  %v3895_v30 = vunpack.c.l.bf16 %v3998_v19 }
  0xf3   : > { %v1837_v19 = vadd.s32 4294967224, %v5040_v20 }
  0xf4   : > { %v1063_v50 = vmax.f32 %v3895_v30, 0.0 }
  0xf5   : > { %1112 = vadd.xlane.f32.xlu1 %v1111_v39  ;;  %v1030_v39 = vmax.f32 %v3828_v33, 0.0  ;;  %v4225_v33 = vld [vmem:[%s4886_s30 + $0xe4] ss:$16 sps:$4 sm:$0xff]  }
  0xf6   : > { %1109 = vadd.xlane.f32.xlu0 %v1108_v40  ;;  %v1029_v40 = vmax.f32 %v3827_v34, 0.0  ;;  %v5051_v34 = vshrl.u32 %v1775_v10, 7  ;;  %2771 = vmatprep.subr.bf16.mxu0 %v4225_v33 }
  0xf7   : > { %v1177_v46 = vsel %vm1101_vm0, %v1030_v39, 0.0  ;;  %v1795_v39 = vadd.s32 4294967272, %v5040_v20 }
  0xf8   : > { %v1174_v47 = vsel %vm1101_vm0, %v1029_v40, 0.0  ;;  %v3932_v40 = vunpack.c.h.bf16 %v4007_v28 }
  0xf9   : > { %1256 = vadd.xlane.f32.xlu1 %v1255_v44  ;;  %v3796_v44 = vunpack.c.h.bf16 %v3973_v43 }
  0xfa   : > { %1253 = vadd.xlane.f32.xlu0 %v1252_v45  ;;  %v3795_v45 = vunpack.c.l.bf16 %v3973_v43 }
  0xfb   : > { %v1014_v55 = vmax.f32 %v3796_v44, 0.0 }
  0xfc   : > { %v1013_v56 = vmax.f32 %v3795_v45, 0.0 }
  0xfd   : > { %1166 = vadd.xlane.f32.xlu1 %v1165_v53  ;;  %v1321_v53 = vsel %vm1101_vm0, %v1078_v48, 0.0  ;;  %v1064_v48 = vmax.f32 %v3896_v27, 0.0  ;;  %v3900_v27 = vunpack.c.h.bf16 %v3999_v7 }
  0xfe   : > { %1163 = vadd.xlane.f32.xlu0 %v1162_v54  ;;  %v1318_v54 = vsel %vm1101_vm0, %v1077_v49, 0.0 }
 0x101   : > { %1310 = vadd.xlane.f32.xlu1 %v1309_v60  ;;  %v1129_v60 = vsel %vm1101_vm0, %v1014_v55, 0.0  ;;  %v5073_v55 = vsub.s32 %v1781_v35, %v5051_v34  ;;  %v5112_v35 = vld [vmem:[%s4884_s24 + $0x138] sm:$0xff]  }
 0x102   : > { %1307 = vadd.xlane.f32.xlu0 %v1306_v61  ;;  %v1126_v61 = vsel %vm1101_vm0, %v1013_v56, 0.0  ;;  %v3931_v56 = vunpack.c.l.bf16 %v4007_v28 }
 0x105   : > { %1118 = vadd.xlane.f32.xlu1 %v1117_v3 }
 0x106   : > { %1115 = vadd.xlane.f32.xlu0 %v1114_v4 }
 0x109   : > { %1262 = vadd.xlane.f32.xlu1 %v1261_v8  ;;  %v3927_v8 = vunpack.c.l.bf16 %v4006_v0 }
 0x10a   : > { %1259 = vadd.xlane.f32.xlu0 %v1258_v9  ;;  %v3974_v9 = vld [vmem:[%s4884_s24 + $0x28] sm:$0xff]  }
 0x10b   : > { %v1079_v16 = vmax.f32 %v3927_v8, 0.0  ;;  %v3984_v8 = vld [vmem:[%s4884_s24 + $0x78] sm:$0xff]  }
 0x10c   : > { %v3839_v33 = vunpack.c.l.bf16 %v3984_v8 }
 0x10d   : > { %1172 = vadd.xlane.f32.xlu1 %v1171_v17  ;;  %v3800_v17 = vunpack.c.h.bf16 %v3974_v9 }
 0x10e   : > { %1169 = vadd.xlane.f32.xlu0 %v1168_v18  ;;  %v3799_v18 = vunpack.c.l.bf16 %v3974_v9  ;;  %v1276_v9 = vsel %vm1101_vm0, %v1063_v50, 0.0 }
 0x10f   : > { %v1016_v26 = vmax.f32 %v3800_v17, 0.0  ;;  %v1018_v17 = vmax.f32 %v3804_v57, 0.0 }
 0x110   : > { %v1015_v29 = vmax.f32 %v3799_v18, 0.0  ;;  %v1830_v18 = vadd.s32 4294967232, %v5040_v20 }
 0x111   : > { %1316 = vadd.xlane.f32.xlu1 %v1315_v24  ;;  %v1327_v24 = vsel %vm1101_vm0, %v1080_v11, 0.0  ;;  %v1135_v45 = vsel %vm1101_vm0, %v1016_v26, 0.0  ;;  %v1017_v26 = vmax.f32 %v3803_v62, 0.0  ;;  %v1141_v42 = vsel %vm1101_vm0, %v1018_v17, 0.0  ;;  %v4249_v62 = vld [vmem:[%s4886_s30 + $0x64] ss:$16 sps:$4 sm:$0xff]  }
 0x112   : > { %1313 = vadd.xlane.f32.xlu0 %v1312_v25  ;;  %v1324_v25 = vsel %vm1101_vm0, %v1079_v16, 0.0  ;;  %v1132_v49 = vsel %vm1101_vm0, %v1015_v29, 0.0  ;;  %v1081_v16 = vmax.f32 %v3931_v56, 0.0  ;;  %v3935_v17 = vunpack.c.l.bf16 %v5112_v35 }
 0x114   : > { %v1330_v41 = vsel %vm1101_vm0, %v1081_v16, 0.0 }
 0x115   : > { %1124 = vadd.xlane.f32.xlu1 %v1123_v31  ;;  %v3836_v31 = vunpack.c.h.bf16 %v3983_v21 }
 0x116   : > { %1121 = vadd.xlane.f32.xlu0 %v1120_v32  ;;  %v3835_v32 = vunpack.c.l.bf16 %v3983_v21  ;;  %v4239_v21 = vld [vmem:[%s4886_s30 + $0xa0] ss:$16 sps:$4 sm:$0xff]  }
 0x117   : > { %v1034_v51 = vmax.f32 %v3836_v31, 0.0  ;;  %v3899_v31 = vunpack.c.l.bf16 %v3999_v7  ;;  %v5142_v7 = vsub.s32 %v1837_v19, %v5051_v34 }
 0x118   : > { %v1033_v52 = vmax.f32 %v3835_v32, 0.0  ;;  %v3840_v32 = vunpack.c.h.bf16 %v3984_v8  ;;  %v4251_v8 = vld [vmem:[%s4886_s30 + $0x60] ss:$16 sps:$4 sm:$0xff]  }
 0x119   : > { %1268 = vadd.xlane.f32.xlu1 %v1267_v37  ;;  %v4227_v37 = vld [vmem:[%s4886_s30 + $0xe0] ss:$16 sps:$4 sm:$0xff]   ;;  %v1189_v10 = vsel %vm1101_vm0, %v1034_v51, 0.0  ;;  %v1065_v51 = vmax.f32 %v3899_v31, 0.0 }
 0x11a   : > { %1265 = vadd.xlane.f32.xlu0 %v1264_v38  ;;  %v1788_v38 = vadd.s32 4294967280, %v5040_v20  ;;  %2772 = vmatpush1.bf16.msra.mxu0 %v4227_v37  ;;  %v1186_v11 = vsel %vm1101_vm0, %v1033_v52, 0.0  ;;  %v1036_v52 = vmax.f32 %v3840_v32, 0.0  ;;  %v4257_v32 = vld [vmem:[%s4886_s30 + $0x40] ss:$16 sps:$4 sm:$0xff]  }
 0x11c   : > { %v5077_v59 = vsub.s32 %v1788_v38, %v5051_v34  ;;  %v5117_v38 = vsub.s32 %v1816_v6, %v5051_v34 }
 0x11d   : > { %1178 = vadd.xlane.f32.xlu1 %v1177_v46  ;;  %v1802_v46 = vadd.s32 4294967264, %v5040_v20 }
 0x11e   : > { %1175 = vadd.xlane.f32.xlu0 %v1174_v47  ;;  %v1809_v47 = vadd.s32 4294967256, %v5040_v20 }
 0x11f   : > { %v5085_v0 = vsub.s32 %v1802_v46, %v5051_v34 }
 0x121   : > { %1322 = vadd.xlane.f32.xlu1 %v1321_v53  ;;  %v4231_v53 = vld [vmem:[%s4886_s30 + $0xc4] ss:$16 sps:$4 sm:$0xff]  }
 0x122   : > { %1319 = vadd.xlane.f32.xlu0 %v1318_v54  ;;  %v5070_v54 = vsub.s32 %v5040_v20, %v5051_v34  ;;  %2773 = vmatprep.subr.bf16.mxu0 %v4231_v53  ;;  %v1035_v53 = vmax.f32 %v3839_v33, 0.0 }
 0x123   : > { %2774 = vmatpush1.bf16.msra.mxu0 %v4233_v58 }
 0x125   : > { %1130 = vadd.xlane.f32.xlu1 %v1129_v60  ;;  %v5080_v60 = vsub.s32 %v1795_v39, %v5051_v34  ;;  %v4243_v39 = vld [vmem:[%s4886_s30 + $0x84] ss:$16 sps:$4 sm:$0xff]  }
 0x126   : > { %1127 = vadd.xlane.f32.xlu0 %v1126_v61  ;;  %v5027_v3 = vpop.xlane.xlu1 %1343  ;;  %v1082_v61 = vmax.f32 %v3932_v40, 0.0 }
 0x127   : > { %v5029_v4 = vpop.xlane.xlu0 %1199 }
 0x128   : > { %v1422_v28 = vmul.f32 0.020408163, %v5029_v4 }
 0x129   : > { %1274 = vadd.xlane.f32.xlu1 %v1273_v1  ;;  %v5088_v1 = vsub.s32 %v1809_v47, %v5051_v34  ;;  %v1066_v47 = vmax.f32 %v3900_v27, 0.0 }
 0x12a   : > { %1271 = vadd.xlane.f32.xlu0 %v1270_v5  ;;  %v5033_v12 = vpop.xlane.xlu1 %1346  ;;  %v1279_v5 = vsel %vm1101_vm0, %v1064_v48, 0.0  ;;  %v1844_v48 = vadd.s32 4294967216, %v5040_v20 }
 0x12b   : > { %v5035_v13 = vpop.xlane.xlu0 %1202  ;;  %v1471_v40 = vmul.f32 0.020408163, %v5033_v12 }
 0x12c   : > { %v5157_v16 = vsub.s32 %v1844_v48, %v5051_v34 }
 0x12d   : > { %1184 = vadd.xlane.f32.xlu1 %v1183_v14  ;;  %v1823_v14 = vadd.s32 4294967240, %v5040_v20 }
 0x12e   : > { %1181 = vadd.xlane.f32.xlu0 %v1180_v15  ;;  %v5043_v22 = vpop.xlane.xlu1 %1208  ;;  %v4237_v15 = vld [vmem:[%s4886_s30 + $0xa4] ss:$16 sps:$4 sm:$0xff]  }
 0x12f   : > { %v5045_v23 = vpop.xlane.xlu0 %1205  ;;  %2775 = vmatprep.subr.bf16.mxu0 %v4237_v15  ;;  %v5120_v4 = vsub.s32 %v1823_v14, %v5051_v34  ;;  %v5154_v15 = vsel %vm1101_vm0, %v1036_v52, 0.0 }
 0x130   : > { %v1424_v37 = vmul.f32 0.020408163, %v5045_v23  ;;  %2776 = vmatpush1.bf16.msra.mxu0 %v4239_v21  ;;  %v1138_v23 = vsel %vm1101_vm0, %v1017_v26, 0.0  ;;  %v5164_v21 = vsel %vm1101_vm0, %v1035_v53, 0.0  ;;  %v4263_v53 = vld [vmem:[%s4886_s30 + $0x20] ss:$16 sps:$4 sm:$0xff]  }
 0x131   : > { %1328 = vadd.xlane.f32.xlu1 %v1327_v24  ;;  %v1423_v24 = vmul.f32 0.020408163, %v5035_v13  ;;  %v1425_v13 = vmul.f32 0.020408163, %v5043_v22  ;;  %v4245_v22 = vld [vmem:[%s4886_s30 + $0x80] ss:$16 sps:$4 sm:$0xff]   ;;  %2777 = vmatprep.subr.bf16.mxu0 %v4243_v39 }
 0x132   : > { %1325 = vadd.xlane.f32.xlu0 %v1324_v25  ;;  %v5059_v43 = vpop.xlane.xlu1 %1352  ;;  %v1333_v25 = vsel %vm1101_vm0, %v1082_v61, 0.0  ;;  %v3936_v61 = vunpack.c.h.bf16 %v5112_v35  ;;  %v4000_v39 = vld [vmem:[%s4884_s24 + $0xf8] sm:$0xff]  }
 0x133   : > { %v5061_v44 = vpop.xlane.xlu0 %1349  ;;  %v1503_v46 = vpack.c.bf16 %v1423_v24, %v1422_v28  ;;  %v5133_v56 = vpack.c.bf16 %v1425_v13, %v1424_v37  ;;  %v1473_v57 = vmul.f32 0.020408163, %v5059_v43  ;;  %v1285_v43 = vsel %vm1101_vm0, %v1066_v47, 0.0 }
 0x134   : > { %v1472_v58 = vmul.f32 0.020408163, %v5061_v44  ;;  %2778 = vmatpush1.bf16.msra.mxu0 %v4245_v22  ;;  %v5147_v44 = vadd.s32 4294967208, %v5040_v20  ;;  %v1084_v24 = vmax.f32 %v3936_v61, 0.0  ;;  %v3904_v52 = vunpack.c.h.bf16 %v4000_v39 }
 0x135   : > { %1136 = vadd.xlane.f32.xlu1 %v1135_v45  ;;  %v5127_v45 = vsub.s32 %v1830_v18, %v5051_v34  ;;  %2779 = vmatprep.subr.bf16.mxu0 %v4249_v62  ;;  %v1713_v18 = vunpack.c.l.b16 %v5133_v56  ;;  %v3903_v61 = vunpack.c.l.bf16 %v4000_v39 }
 0x136   : > { %1133 = vadd.xlane.f32.xlu0 %v1132_v49  ;;  %v5082_v63 = vpop.xlane.xlu1 %1214  ;;  %v1470_v49 = vmul.f32 0.020408163, %v5027_v3  ;;  %v5161_v19 = vpack.c.bf16 %v1473_v57, %v1472_v58 }
 0x137   : > { %v5090_v2 = vpop.xlane.xlu0 %1211 }
 0x138   : > { %v1527_v3 = vpack.c.bf16 %v1471_v40, %v1470_v49  ;;  %v1426_v6 = vmul.f32 0.020408163, %v5090_v2  ;;  %v1282_v2 = vsel %vm1101_vm0, %v1065_v51, 0.0  ;;  %2780 = vmatpush1.bf16.msra.mxu0 %v4251_v8  ;;  %v1714_v40 = vunpack.c.h.b16 %v5133_v56  ;;  %v4261_v51 = vld [vmem:[%s4886_s30 + $0x24] ss:$16 sps:$4 sm:$0xff]  }
 0x139   : > { %1280 = vadd.xlane.f32.xlu1 %v1279_v5  ;;  %v1427_v5 = vmul.f32 0.020408163, %v5082_v63  ;;  %v1977_v49 = vrot.slane %v1713_v18, %v5077_v59  ;;  %v4267_v18 = vld [vmem:[%s4886_s30 + $0x4] ss:$16 sps:$4 sm:$0xff]  }
 0x13a   : > { %1277 = vadd.xlane.f32.xlu0 %v1276_v9  ;;  %v5107_v29 = vpop.xlane.xlu1 %1358  ;;  %v1711_v9 = vunpack.c.l.b16 %v1503_v46  ;;  %v1759_v26 = vunpack.c.l.b16 %v1527_v3  ;;  %v1760_v27 = vunpack.c.h.b16 %v1527_v3  ;;  %v1982_v62 = vrot.slane %v1714_v40, %v5080_v60 }
 0x13b   : > { %v5109_v30 = vpop.xlane.xlu0 %1355  ;;  %v5167_v28 = vpack.c.bf16 %v1427_v5, %v1426_v6  ;;  %v1475_v13 = vmul.f32 0.020408163, %v5107_v29  ;;  %v1761_v29 = vunpack.c.l.b16 %v5161_v19 }
 0x13c   : > { %v1968_v33 = vrot.slane %v1711_v9, %v5070_v54  ;;  %v1474_v37 = vmul.f32 0.020408163, %v5109_v30  ;;  %v5181_v30 = vsel %vm1101_vm0, %v1084_v24, 0.0  ;;  %v2209_v56 = vrot.slane %v1760_v27, %v5073_v55 }
 0x13d   : > { %1190 = vadd.xlane.f32.xlu1 %v1189_v10  ;;  %v1712_v10 = vunpack.c.h.b16 %v1503_v46  ;;  %v1716_v24 = vunpack.c.h.b16 %v5167_v28 }
 0x13e   : > { %1187 = vadd.xlane.f32.xlu0 %v1186_v11  ;;  %v1221_v12 = vpop.xlane.xlu1 %1220  ;;  %v5150_v11 = vld [vmem:[%s4884_s24 + $0x38] sm:$0xff]   ;;  %v5191_v58 = vpack.c.bf16 %v1475_v13, %v1474_v37 }
 0x13f   : > { %v1218_v50 = vpop.xlane.xlu0 %1217  ;;  %v3808_v31 = vunpack.c.h.bf16 %v5150_v11  ;;  %v1972_v35 = vrot.slane %v1712_v10, %v5073_v55  ;;  %v3807_v48 = vunpack.c.l.bf16 %v5150_v11  ;;  %v1762_v11 = vunpack.c.h.b16 %v5161_v19 }
 0x140   : > { %v1428_v22 = vmul.f32 0.020408163, %v1218_v50  ;;  %v1715_v50 = vunpack.c.l.b16 %v5167_v28  ;;  %v1068_v19 = vmax.f32 %v3904_v52, 0.0 }
 0x141   : > { %1334 = vadd.xlane.f32.xlu1 %v1333_v25  ;;  %v4255_v25 = vld [vmem:[%s4886_s30 + $0x44] ss:$16 sps:$4 sm:$0xff]   ;;  %v1973_v57 = vsel %vm1786_vm1, %v1972_v35, %v1968_v33  ;;  %v2219_v39 = vrot.slane %v1762_v11, %v5080_v60 }
 0x142   : > { %1331 = vadd.xlane.f32.xlu0 %v1330_v41  ;;  %v1365_v63 = vpop.xlane.xlu1 %1364  ;;  %v1429_v41 = vmul.f32 0.020408163, %v1221_v12  ;;  %2781 = vmatprep.subr.bf16.mxu0 %v4255_v25  ;;  %v2205_v12 = vrot.slane %v1759_v26, %v5070_v54  ;;  %v1978_v10 = vsel %vm1793_vm2, %v1977_v49, %v1973_v57  ;;  %v1987_v25 = vrot.slane %v1715_v50, %v5085_v0 }
 0x143   : > { %v1362_v14 = vpop.xlane.xlu0 %1361  ;;  %2782 = vmatpush1.bf16.msra.mxu0 %v4257_v32  ;;  %v1477_v5 = vmul.f32 0.020408163, %v1365_v63  ;;  %v1983_v33 = vsel %vm1800_vm3, %v1982_v62, %v1978_v10  ;;  %v4281_v10 = vld [vmem:[%s4886_s30 + $0x1c0] ss:$16 sps:$4 sm:$0xff]  }
 0x144   : > { %2783 = vmatprep.subr.bf16.mxu0 %v4261_v51  ;;  %v5194_v3 = vpack.c.bf16 %v1429_v41, %v1428_v22  ;;  %v1476_v6 = vmul.f32 0.020408163, %v1362_v14  ;;  %v4269_v14 = vld [vmem:[%s4886_s30] ss:$16 sps:$4 sm:$0xff]   ;;  %v2210_v32 = vsel %vm1786_vm1, %v2209_v56, %v2205_v12  ;;  %v4273_v22 = vld [vmem:[%s4886_s30 + $0x1e4] ss:$16 sps:$4 sm:$0xff]  }
 0x145   : > { %1142 = vadd.xlane.f32.xlu1 %v1141_v42  ;;  %v1083_v42 = vmax.f32 %v3935_v17, 0.0  ;;  %v2214_v17 = vrot.slane %v1761_v29, %v5077_v59  ;;  %v4275_v29 = vld [vmem:[%s4886_s30 + $0x1e0] ss:$16 sps:$4 sm:$0xff]  }
 0x146   : > { %1139 = vadd.xlane.f32.xlu0 %v1138_v23  ;;  %v1227_v46 = vpop.xlane.xlu1 %1226  ;;  %v5186_v23 = vmax.f32 %v3808_v31, 0.0  ;;  %v1067_v31 = vmax.f32 %v3903_v61, 0.0  ;;  %v1717_v28 = vunpack.c.l.b16 %v5194_v3  ;;  %v5209_v35 = vpack.c.bf16 %v1477_v5, %v1476_v6  ;;  %v4279_v5 = vld [vmem:[%s4886_s30 + $0x1c4] ss:$16 sps:$4 sm:$0xff]  }
 0x147   : > { %v1224_v47 = vpop.xlane.xlu0 %1223  ;;  %2784 = vmatpush1.bf16.msra.mxu0 %v4263_v53  ;;  %v1431_v63 = vmul.f32 0.020408163, %v1227_v46  ;;  %v1336_v27 = vsel %vm1101_vm0, %v1083_v42, 0.0  ;;  %v2215_v37 = vsel %vm1793_vm2, %v2214_v17, %v2210_v32  ;;  %v1988_v46 = vsel %vm1807_vm4, %v1987_v25, %v1983_v33  ;;  %v4285_v33 = vld [vmem:[%s4886_s30 + $0x1a4] ss:$16 sps:$4 sm:$0xff]  }
 0x148   : > { %v1430_v26 = vmul.f32 0.020408163, %v1224_v47  ;;  %2785 = vmatprep.subr.bf16.mxu0 %v4267_v18  ;;  %v1992_v47 = vrot.slane %v1716_v24, %v5088_v1  ;;  %v1718_v42 = vunpack.c.h.b16 %v5194_v3  ;;  %v1997_v50 = vrot.slane %v1717_v28, %v5117_v38 }
 0x149   : > { %1286 = vadd.xlane.f32.xlu1 %v1285_v43  ;;  %v1019_v43 = vmax.f32 %v3807_v48, 0.0  ;;  %v1764_v48 = vunpack.c.h.b16 %v5191_v58  ;;  %v1765_v52 = vunpack.c.l.b16 %v5209_v35  ;;  %v1147_v57 = vsel %vm1101_vm0, %v5186_v23, 0.0 }
 0x14a   : > { %1283 = vadd.xlane.f32.xlu0 %v1282_v2  ;;  %v1371_v8 = vpop.xlane.xlu1 %1370  ;;  %v1763_v2 = vunpack.c.l.b16 %v5191_v58  ;;  %v5218_v49 = vpack.c.bf16 %v1431_v63, %v1430_v26  ;;  %v2220_v61 = vsel %vm1800_vm3, %v2219_v39, %v2215_v37  ;;  %v1993_v6 = vsel %vm1814_vm5, %v1992_v47, %v1988_v46  ;;  %v4287_v37 = vld [vmem:[%s4886_s30 + $0x1a0] ss:$16 sps:$4 sm:$0xff]  }
 0x14b   : > { %v1368_v9 = vpop.xlane.xlu0 %1367  ;;  %v1479_v40 = vmul.f32 0.020408163, %v1371_v8  ;;  %2786 = vmatpush1.bf16.msra.mxu0 %v4269_v14  ;;  %v1144_v58 = vsel %vm1101_vm0, %v1019_v43, 0.0  ;;  %v2229_v8 = vrot.slane %v1764_v48, %v5088_v1  ;;  %v2002_v17 = vrot.slane %v1718_v42, %v5120_v4 }
 0x14c   : > { %v1478_v41 = vmul.f32 0.020408163, %v1368_v9  ;;  %2787 = vmatprep.subr.bf16.mxu0 %v4273_v22  ;;  %v1719_v9 = vunpack.c.l.b16 %v5218_v49  ;;  %v1288_v18 = vsel %vm1101_vm0, %v1067_v31, 0.0  ;;  %v1998_v24 = vsel %vm1821_vm6, %v1997_v50, %v1993_v6  ;;  %v4291_v50 = vld [vmem:[%s4886_s30 + $0x184] ss:$16 sps:$4 sm:$0xff]  }
 0x14d   : > { %1196 = vadd.xlane.f32.xlu1 %v5154_v15  ;;  %v1766_v25 = vunpack.c.h.b16 %v5209_v35  ;;  %v2234_v63 = vrot.slane %v1765_v52, %v5117_v38  ;;  %v1720_v26 = vunpack.c.h.b16 %v5218_v49  ;;  %v5254_v35 = vsub.s32 %v5147_v44, %v5051_v34 }
 0x14e   : > { %1193 = vadd.xlane.f32.xlu0 %v5164_v21  ;;  %v1233_v13 = vpop.xlane.xlu1 %1232  ;;  %v2224_v21 = vrot.slane %v1763_v2, %v5085_v0  ;;  %v5230_v62 = vpack.c.bf16 %v1479_v40, %v1478_v41  ;;  %v2007_v28 = vrot.slane %v1719_v9, %v5127_v45  ;;  %v2003_v40 = vsel %vm1828_vm7, %v2002_v17, %v1998_v24  ;;  %v4297_v24 = vld [vmem:[%s4886_s30 + $0x164] ss:$16 sps:$4 sm:$0xff]  }
 0x14f   : > { %v1230_v15 = vpop.xlane.xlu0 %1229  ;;  %v1433_v51 = vmul.f32 0.020408163, %v1233_v13  ;;  %2788 = vmatpush2.bf16.msra.mxu0 %v4275_v29  ;;  %v1858_v13 = vadd.s32 4294967200, %v5040_v20  ;;  %v2239_v44 = vrot.slane %v1766_v25, %v5120_v4  ;;  %v2012_v47 = vrot.slane %v1720_v26, %v5142_v7 }
 0x150   : > { %v1432_v12 = vmul.f32 0.020408163, %v1230_v15  ;;  %v2225_v11 = vsel %vm1807_vm4, %v2224_v21, %v2220_v61  ;;  %2789 = vmatprep.subr.bf16.mxu0 %v4279_v5  ;;  %v1865_v15 = vadd.s32 4294967192, %v5040_v20  ;;  %v1768_v48 = vunpack.c.h.b16 %v5230_v62 }
 0x151   : > { %1340 = vadd.xlane.f32.xlu1 %v5181_v30  ;;  %v1291_v30 = vsel %vm1101_vm0, %v1068_v19, 0.0  ;;  %v2230_v39 = vsel %vm1814_vm5, %v2229_v8, %v2225_v11  ;;  %v2008_v52 = vsel %vm1835_vm8, %v2007_v28, %v2003_v40  ;;  %vm2281_vm0 = vcmask 1041409  }
 0x152   : > { %1337 = vadd.xlane.f32.xlu0 %v1336_v27  ;;  %v1377_v53 = vpop.xlane.xlu1 %1376  ;;  %v5240_v43 = vpack.c.bf16 %v1433_v51, %v1432_v12  ;;  %v1767_v27 = vunpack.c.l.b16 %v5230_v62  ;;  %v2235_v46 = vsel %vm1821_vm6, %v2234_v63, %v2230_v39  ;;  %v2249_v6 = vrot.slane %v1768_v48, %v5142_v7  ;;  %v4305_v48 = vld [vmem:[%s4886_s30 + $0x140] ss:$16 sps:$4 sm:$0xff]  }
 0x153   : > { %v1374_v56 = vpop.xlane.xlu0 %1373  ;;  %v1481_v3 = vmul.f32 0.020408163, %v1377_v53  ;;  %2790 = vmatpush2.bf16.msra.mxu0 %v4281_v10  ;;  %v2240_v5 = vsel %vm1828_vm7, %v2239_v44, %v2235_v46  ;;  %v2013_v11 = vsel %vm1842_vm9, %v2012_v47, %v2008_v52 }
 0x154   : > { %v1480_v23 = vmul.f32 0.020408163, %v1374_v56  ;;  %v1721_v41 = vunpack.c.l.b16 %v5240_v43  ;;  %2791 = vmatprep.subr.bf16.mxu0 %v4285_v33  ;;  %v2244_v21 = vrot.slane %v1767_v27, %v5127_v45  ;;  %v1722_v53 = vunpack.c.h.b16 %v5240_v43 }
 0x155   : > { %1148 = vadd.xlane.f32.xlu1 %v1147_v57  ;;  %v5272_v56 = vsub.s32 %v1858_v13, %v5051_v34  ;;  %v5275_v57 = vsub.s32 %v1865_v15, %v5051_v34 }
 0x156   : > { %1145 = vadd.xlane.f32.xlu0 %v1144_v58  ;;  %v1239_v14 = vpop.xlane.xlu1 %1238  ;;  %v5248_v19 = vpack.c.bf16 %v1481_v3, %v1480_v23  ;;  %v4293_v58 = vld [vmem:[%s4886_s30 + $0x180] ss:$16 sps:$4 sm:$0xff]   ;;  %v2017_v61 = vrot.slane %v1721_v41, %v5157_v16  ;;  %v1879_v23 = vadd.s32 4294967176, %v5040_v20  ;;  %v2245_v17 = vsel %vm1835_vm8, %v2244_v21, %v2240_v5  ;;  %v4303_v41 = vld [vmem:[%s4886_s30 + $0x144] ss:$16 sps:$4 sm:$0xff]  }
 0x157   : > { %v1236_v2 = vpop.xlane.xlu0 %1235  ;;  %v1435_v32 = vmul.f32 0.020408163, %v1239_v14  ;;  %2792 = vmatpush2.bf16.msra.mxu0 %v4287_v37  ;;  %v2022_v25 = vrot.slane %v1722_v53, %v5254_v35 }
 0x158   : > { %v1434_v31 = vmul.f32 0.020408163, %v1236_v2  ;;  %v1769_v42 = vunpack.c.l.b16 %v5248_v19  ;;  %2793 = vmatprep.subr.bf16.mxu0 %v4291_v50  ;;  %v1770_v8 = vunpack.c.h.b16 %v5248_v19  ;;  %v4299_v2 = vld [vmem:[%s4886_s30 + $0x160] ss:$16 sps:$4 sm:$0xff]   ;;  %v2018_v27 = vsel %vm1849_vm10, %v2017_v61, %v2013_v11 }
 0x159   : > { %1292 = vadd.xlane.f32.xlu1 %v1291_v30  ;;  %v1872_v30 = vadd.s32 4294967184, %v5040_v20 }
 0x15a   : > { %v1509_v22 = vpack.c.bf16 %v1435_v32, %v1434_v31  ;;  %1289 = vadd.xlane.f32.xlu0 %v1288_v18  ;;  %v1383_v49 = vpop.xlane.xlu1 %1382  ;;  %v2254_v43 = vrot.slane %v1769_v42, %v5157_v16  ;;  %v2250_v32 = vsel %vm1842_vm9, %v2249_v6, %v2245_v17  ;;  %v2259_v31 = vrot.slane %v1770_v8, %v5254_v35  ;;  %v4311_v8 = vld [vmem:[%s4886_s30 + $0x120] ss:$16 sps:$4 sm:$0xff]  }
 0x15b   : > { %v1380_v29 = vpop.xlane.xlu0 %1379  ;;  %v1483_v51 = vmul.f32 0.020408163, %v1383_v49  ;;  %2794 = vmatpush2.bf16.msra.mxu0 %v4293_v58  ;;  %v5293_v19 = vsub.s32 %v1872_v30, %v5051_v34  ;;  %v4309_v30 = vld [vmem:[%s4886_s30 + $0x124] ss:$16 sps:$4 sm:$0xff]  }
 0x15c   : > { %v1482_v12 = vmul.f32 0.020408163, %v1380_v29  ;;  %v1723_v62 = vunpack.c.l.b16 %v1509_v22  ;;  %v1724_v63 = vunpack.c.h.b16 %v1509_v22  ;;  %2795 = vmatprep.subr.bf16.mxu0 %v4297_v24  ;;  %v2255_v37 = vsel %vm1849_vm10, %v2254_v43, %v2250_v32  ;;  %v4315_v24 = vld [vmem:[%s4886_s30 + $0x104] ss:$16 sps:$4 sm:$0xff]  }
 0x15d   : > { %v2023_v22 = vsel %vm1856_vm11, %v2022_v25, %v2018_v27  ;;  %v5305_v29 = vsub.s32 %v1879_v23, %v5051_v34  ;;  %v4323_v27 = vld [vmem:[%s4886_s30 + $0x2ec] ss:$16 sps:$4 sm:$0xff]  }
 0x15e   : > { %v1533_v3 = vpack.c.bf16 %v1483_v51, %v1482_v12  ;;  %v1245_v9 = vpop.xlane.xlu1 %1244  ;;  %v2027_v20 = vrot.slane %v1723_v62, %v5272_v56  ;;  %v2032_v46 = vrot.slane %v1724_v63, %v5275_v57  ;;  %v2260_v51 = vsel %vm1856_vm11, %v2259_v31, %v2255_v37  ;;  %v4228_v37 = vld [vmem:[%s4886_s30 + $0xe8] ss:$16 sps:$4 sm:$0xff]  }
 0x15f   : > { %v1242_v10 = vpop.xlane.xlu0 %1241  ;;  %v1437_v18 = vmul.f32 0.020408163, %v1245_v9  ;;  %2796 = vmatpush2.bf16.msra.mxu0 %v4299_v2 }
 0x160   : > { %v1771_v26 = vunpack.c.l.b16 %v1533_v3  ;;  %v1436_v14 = vmul.f32 0.020408163, %v1242_v10  ;;  %v1772_v33 = vunpack.c.h.b16 %v1533_v3  ;;  %v2028_v49 = vsel %vm1863_vm12, %v2027_v20, %v2023_v22  ;;  %2797 = vmatprep.subr.bf16.mxu0 %v4303_v41  ;;  %v4236_v41 = vld [vmem:[%s4886_s30 + $0xcc] ss:$16 sps:$4 sm:$0xff]  }
 0x161   : > { %v2033_v6 = vsel %vm1870_vm13, %v2032_v46, %v2028_v49 }
 0x162   : > { %v1510_v28 = vpack.c.bf16 %v1437_v18, %v1436_v14  ;;  %v1389_v13 = vpop.xlane.xlu1 %1388  ;;  %v2264_v44 = vrot.slane %v1771_v26, %v5272_v56  ;;  %v2269_v12 = vrot.slane %v1772_v33, %v5275_v57  ;;  %v4317_v14 = vld [vmem:[%s4886_s30 + $0x100] ss:$16 sps:$4 sm:$0xff]  }
 0x163   : > { %v1386_v15 = vpop.xlane.xlu0 %1385  ;;  %v1485_v39 = vmul.f32 0.020408163, %v1389_v13  ;;  %2798 = vmatpush2.bf16.msra.mxu0 %v4305_v48 }
 0x164   : > { %v1484_v40 = vmul.f32 0.020408163, %v1386_v15  ;;  %v1725_v47 = vunpack.c.l.b16 %v1510_v28  ;;  %v1726_v21 = vunpack.c.h.b16 %v1510_v28  ;;  %v2265_v5 = vsel %vm1863_vm12, %v2264_v44, %v2260_v51  ;;  %2799 = vmatprep.subr.bf16.mxu0 %v4309_v30  ;;  %v4242_v51 = vld [vmem:[%s4886_s30 + $0xac] ss:$16 sps:$4 sm:$0xff]  }
 0x165   : > { %v2270_v26 = vsel %vm1870_vm13, %v2269_v12, %v2265_v5  ;;  %v4240_v5 = vld [vmem:[%s4886_s30 + $0xa8] ss:$16 sps:$4 sm:$0xff]  }
 0x166   : > { %v1534_v42 = vpack.c.bf16 %v1485_v39, %v1484_v40  ;;  %v2037_v50 = vrot.slane %v1725_v47, %v5293_v19  ;;  %v1155_v52 = vpop.xlane.xlu1 %1154  ;;  %v2042_v9 = vrot.slane %v1726_v21, %v5305_v29 }
 0x167   : > { %v1152_v53 = vpop.xlane.xlu0 %1151  ;;  %v1407_v62 = vmul.f32 0.020408163, %v1155_v52  ;;  %2800 = vmatpush2.bf16.msra.mxu0 %v4311_v8  ;;  %v4248_v8 = vld [vmem:[%s4886_s30 + $0x8c] ss:$16 sps:$4 sm:$0xff]  }
 0x168   : > { %v1773_v58 = vunpack.c.l.b16 %v1534_v42  ;;  %v1774_v61 = vunpack.c.h.b16 %v1534_v42  ;;  %v1406_v3 = vmul.f32 0.020408163, %v1152_v53  ;;  %v2038_v18 = vsel %vm1877_vm14, %v2037_v50, %v2033_v6  ;;  %2801 = vmatprep.subr.bf16.mxu0 %v4315_v24  ;;  %v4234_v42 = vld [vmem:[%s4886_s30 + $0xc8] ss:$16 sps:$4 sm:$0xff]  }
 0x169   : > { %v2043_v32 = vsel %vm1884_vm15, %v2042_v9, %v2038_v18 }
 0x16a   : > { %v2274_v23 = vrot.slane %v1773_v58, %v5293_v19  ;;  %v2279_v10 = vrot.slane %v1774_v61, %v5305_v29  ;;  %v1495_v11 = vpack.c.bf16 %v1407_v62, %v1406_v3  ;;  %v1299_v17 = vpop.xlane.xlu1 %1298 }
 0x16b   : > { %v1296_v43 = vpop.xlane.xlu0 %1295  ;;  %v1455_v25 = vmul.f32 0.020408163, %v1299_v17  ;;  %2802 = vmatpush2.bf16.msra.mxu0 %v4317_v14 }
 0x16c   : > { %v1454_v63 = vmul.f32 0.020408163, %v1296_v43  ;;  %v2275_v2 = vsel %vm1877_vm14, %v2274_v23, %v2270_v26  ;;  %2894 = vmatprep.subr.bf16.mxu0 %v4323_v27  ;;  %v1695_v22 = vunpack.c.l.b16 %v1495_v11  ;;  %v1696_v46 = vunpack.c.h.b16 %v1495_v11 }
 0x16d   : > { %v2280_v31 = vsel %vm1884_vm15, %v2279_v10, %v2275_v2  ;;  %v4254_v2 = vld [vmem:[%s4886_s30 + $0x6c] ss:$16 sps:$4 sm:$0xff]  }
 0x16e   : > { %v1519_v20 = vpack.c.bf16 %v1455_v25, %v1454_v63  ;;  %v1107_v33 = vpop.xlane.xlu1 %1106  ;;  %v2284_v13 = vsel %vm2281_vm0, %v2280_v31, %v2043_v32  ;;  %v1889_v50 = vrot.slane %v1695_v22, %v5070_v54  ;;  %v1893_v52 = vrot.slane %v1696_v46, %v5073_v55  ;;  %v4246_v63 = vld [vmem:[%s4886_s30 + $0x88] ss:$16 sps:$4 sm:$0xff]   ;;  %v4260_v46 = vld [vmem:[%s4886_s30 + $0x4c] ss:$16 sps:$4 sm:$0xff]  }
 0x16f   : > { %v1104_v28 = vpop.xlane.xlu0 %1103  ;;  %v1391_v15 = vmul.f32 0.020408163, %v1107_v33  ;;  %v5327_v40 = vpack.c.b16 %v2284_v13, %v2284_v13 }
 0x170   : > { %v1390_v39 = vmul.f32 0.020408163, %v1104_v28  ;;  %v1743_v6 = vunpack.c.l.b16 %v1519_v20  ;;  %v1744_v9 = vunpack.c.h.b16 %v1519_v20  ;;  %v1894_v17 = vsel %vm1786_vm1, %v1893_v52, %v1889_v50 }
 0x171   : > { %2845 = vmatmul.mubr.bf16.vlgmr.msra.gmra.mxu1 %v5327_v40 }
 0x172   : > { %v1487_v44 = vpack.c.bf16 %v1391_v15, %v1390_v39  ;;  %v1161_v47 = vpop.xlane.xlu1 %1160  ;;  %2854 = vmatpush1.bf16.msra.mxu1 %v4228_v37  ;;  %v2126_v27 = vrot.slane %v1743_v6, %v5070_v54  ;;  %v2130_v20 = vrot.slane %v1744_v9, %v5073_v55  ;;  %v4252_v39 = vld [vmem:[%s4886_s30 + $0x68] ss:$16 sps:$4 sm:$0xff]  }
 0x173   : > { %v1158_v48 = vpop.xlane.xlu0 %1157  ;;  %v1409_v49 = vmul.f32 0.020408163, %v1161_v47  ;;  %2855 = vmatprep.subr.bf16.mxu1 %v4236_v41 }
 0x174   : > { %v1408_v21 = vmul.f32 0.020408163, %v1158_v48  ;;  %v1679_v32 = vunpack.c.l.b16 %v1487_v44  ;;  %v1680_v31 = vunpack.c.h.b16 %v1487_v44  ;;  %v2131_v47 = vsel %vm1786_vm1, %v2130_v20, %v2126_v27 }
 0x176   : > { %v1496_v12 = vpack.c.bf16 %v1409_v49, %v1408_v21  ;;  %v1251_v53 = vpop.xlane.xlu1 %1250  ;;  %2856 = vmatpush1.bf16.msra.mxu1 %v4234_v42  ;;  %v1780_v48 = vrot.slane %v1679_v32, %v5070_v54  ;;  %v1785_v49 = vrot.slane %v1680_v31, %v5073_v55  ;;  %v4272_v32 = vld [vmem:[%s4886_s30 + $0xc] ss:$16 sps:$4 sm:$0xff]  }
 0x177   : > { %v1248_v58 = vpop.xlane.xlu0 %1247  ;;  %v1439_v3 = vmul.f32 0.020408163, %v1251_v53  ;;  %2857 = vmatprep.subr.bf16.mxu1 %v4242_v51 }
 0x178   : > { %v1697_v61 = vunpack.c.l.b16 %v1496_v12  ;;  %v1698_v62 = vunpack.c.h.b16 %v1496_v12  ;;  %v1438_v30 = vmul.f32 0.020408163, %v1248_v58 }
 0x17a   : > { %v1898_v23 = vrot.slane %v1697_v61, %v5077_v59  ;;  %v1903_v10 = vrot.slane %v1698_v62, %v5080_v60  ;;  %v1511_v11 = vpack.c.bf16 %v1439_v3, %v1438_v30  ;;  %v1305_v43 = vpop.xlane.xlu1 %1304  ;;  %2858 = vmatpush1.bf16.msra.mxu1 %v4240_v5  ;;  %v4258_v3 = vld [vmem:[%s4886_s30 + $0x48] ss:$16 sps:$4 sm:$0xff]   ;;  %v4266_v5 = vld [vmem:[%s4886_s30 + $0x2c] ss:$16 sps:$4 sm:$0xff]  }
 0x17b   : > { %v1302_v18 = vpop.xlane.xlu0 %1301  ;;  %v1457_v25 = vmul.f32 0.020408163, %v1305_v43  ;;  %2859 = vmatprep.subr.bf16.mxu1 %v4248_v8 }
 0x17c   : > { %v1899_v24 = vsel %vm1793_vm2, %v1898_v23, %v1894_v17  ;;  %v1456_v14 = vmul.f32 0.020408163, %v1302_v18  ;;  %v1727_v21 = vunpack.c.l.b16 %v1511_v11  ;;  %v1728_v42 = vunpack.c.h.b16 %v1511_v11 }
 0x17d   : > { %v5343_v26 = vsel %vm1800_vm3, %v1903_v10, %v1899_v24  ;;  %v1787_v10 = vsel %vm1786_vm1, %v1785_v49, %v1780_v48 }
 0x17e   : > { %v1520_v33 = vpack.c.bf16 %v1457_v25, %v1456_v14  ;;  %v1113_v28 = vpop.xlane.xlu1 %1112  ;;  %2860 = vmatpush1.bf16.msra.mxu1 %v4246_v63  ;;  %v2047_v11 = vrot.slane %v1727_v21, %v5070_v54  ;;  %v2051_v17 = vrot.slane %v1728_v42, %v5073_v55 }
 0x17f   : > { %v1110_v13 = vpop.xlane.xlu0 %1109  ;;  %v1393_v15 = vmul.f32 0.020408163, %v1113_v28  ;;  %2861 = vmatprep.subr.bf16.mxu1 %v4254_v2  ;;  %v4264_v2 = vld [vmem:[%s4886_s30 + $0x28] ss:$16 sps:$4 sm:$0xff]  }
 0x180   : > { %v1392_v37 = vmul.f32 0.020408163, %v1110_v13  ;;  %v1745_v41 = vunpack.c.l.b16 %v1520_v33  ;;  %v1746_v22 = vunpack.c.h.b16 %v1520_v33  ;;  %v2052_v31 = vsel %vm1786_vm1, %v2051_v17, %v2047_v11 }
 0x182   : > { %v1488_v44 = vpack.c.bf16 %v1393_v15, %v1392_v37  ;;  %v2135_v51 = vrot.slane %v1745_v41, %v5077_v59  ;;  %v2140_v12 = vrot.slane %v1746_v22, %v5080_v60  ;;  %v1257_v50 = vpop.xlane.xlu1 %1256  ;;  %2862 = vmatpush1.bf16.msra.mxu1 %v4252_v39  ;;  %v4270_v41 = vld [vmem:[%s4886_s30 + $0x8] ss:$16 sps:$4 sm:$0xff]  }
 0x183   : > { %v1254_v52 = vpop.xlane.xlu0 %1253  ;;  %v1441_v61 = vmul.f32 0.020408163, %v1257_v50  ;;  %2863 = vmatprep.subr.bf16.mxu1 %v4260_v46 }
 0x184   : > { %v1681_v53 = vunpack.c.l.b16 %v1488_v44  ;;  %v1682_v58 = vunpack.c.h.b16 %v1488_v44  ;;  %v1440_v62 = vmul.f32 0.020408163, %v1254_v52  ;;  %v2136_v30 = vsel %vm1793_vm2, %v2135_v51, %v2131_v47  ;;  %v4276_v52 = vld [vmem:[%s4886_s30 + $0x1e8] ss:$16 sps:$4 sm:$0xff]  }
 0x185   : > { %v2141_v6 = vsel %vm1800_vm3, %v2140_v12, %v2136_v30 }
 0x186   : > { %v1792_v8 = vrot.slane %v1681_v53, %v5077_v59  ;;  %v1799_v9 = vrot.slane %v1682_v58, %v5080_v60  ;;  %v1512_v23 = vpack.c.bf16 %v1441_v61, %v1440_v62  ;;  %v1167_v43 = vpop.xlane.xlu1 %1166  ;;  %2864 = vmatpush1.bf16.msra.mxu1 %v4258_v3  ;;  %v4284_v58 = vld [vmem:[%s4886_s30 + $0x1cc] ss:$16 sps:$4 sm:$0xff]  }
 0x187   : > { %v1164_v18 = vpop.xlane.xlu0 %1163  ;;  %v1411_v14 = vmul.f32 0.020408163, %v1167_v43  ;;  %2865 = vmatprep.subr.bf16.mxu1 %v4266_v5 }
 0x188   : > { %v1794_v24 = vsel %vm1793_vm2, %v1792_v8, %v1787_v10  ;;  %v1729_v25 = vunpack.c.l.b16 %v1512_v23  ;;  %v1730_v63 = vunpack.c.h.b16 %v1512_v23  ;;  %v1410_v20 = vmul.f32 0.020408163, %v1164_v18  ;;  %v4290_v18 = vld [vmem:[%s4886_s30 + $0x1ac] ss:$16 sps:$4 sm:$0xff]  }
 0x189   : > { %v1801_v27 = vsel %vm1800_vm3, %v1799_v9, %v1794_v24 }
 0x18a   : > { %v2056_v54 = vrot.slane %v1729_v25, %v5077_v59  ;;  %v2061_v55 = vrot.slane %v1730_v63, %v5080_v60  ;;  %v1497_v33 = vpack.c.bf16 %v1411_v14, %v1410_v20  ;;  %v1311_v28 = vpop.xlane.xlu1 %1310  ;;  %2866 = vmatpush1.bf16.msra.mxu1 %v4264_v2  ;;  %v4278_v59 = vld [vmem:[%s4886_s30 + $0x1ec] ss:$16 sps:$4 sm:$0xff]   ;;  %v4288_v20 = vld [vmem:[%s4886_s30 + $0x1a8] ss:$16 sps:$4 sm:$0xff]  }
 0x18b   : > { %v1308_v13 = vpop.xlane.xlu0 %1307  ;;  %v1459_v37 = vmul.f32 0.020408163, %v1311_v28  ;;  %2867 = vmatprep.subr.bf16.mxu1 %v4272_v32 }
 0x18c   : > { %v2057_v15 = vsel %vm1793_vm2, %v2056_v54, %v2052_v31  ;;  %v1458_v39 = vmul.f32 0.020408163, %v1308_v13  ;;  %v1699_v46 = vunpack.c.l.b16 %v1497_v33  ;;  %v1700_v47 = vunpack.c.h.b16 %v1497_v33  ;;  %v4296_v31 = vld [vmem:[%s4886_s30 + $0x18c] ss:$16 sps:$4 sm:$0xff]  }
 0x18d   : > { %v2062_v22 = vsel %vm1800_vm3, %v2061_v55, %v2057_v15 }
 0x18e   : > { %v1521_v60 = vpack.c.bf16 %v1459_v37, %v1458_v39  ;;  %v1908_v48 = vrot.slane %v1699_v46, %v5085_v0  ;;  %v1913_v49 = vrot.slane %v1700_v47, %v5088_v1  ;;  %v1119_v44 = vpop.xlane.xlu1 %1118  ;;  %2868 = vmatpush1.bf16.msra.mxu1 %v4270_v41  ;;  %v4302_v39 = vld [vmem:[%s4886_s30 + $0x16c] ss:$16 sps:$4 sm:$0xff]  }
 0x18f   : > { %v1116_v21 = vpop.xlane.xlu0 %1115  ;;  %v1395_v12 = vmul.f32 0.020408163, %v1119_v44  ;;  %2869 = vmatprep.subr.bf16.mxu1 %v4278_v59 }
 0x190   : > { %v1747_v42 = vunpack.c.l.b16 %v1521_v60  ;;  %v1748_v51 = vunpack.c.h.b16 %v1521_v60  ;;  %v1394_v50 = vmul.f32 0.020408163, %v1116_v21  ;;  %v1909_v53 = vsel %vm1807_vm4, %v1908_v48, %v5343_v26  ;;  %v4282_v26 = vld [vmem:[%s4886_s30 + $0x1c8] ss:$16 sps:$4 sm:$0xff]  }
 0x191   : > { %v5382_v61 = vsel %vm1814_vm5, %v1913_v49, %v1909_v53  ;;  %v4306_v48 = vld [vmem:[%s4886_s30 + $0x148] ss:$16 sps:$4 sm:$0xff]  }
 0x192   : > { %v2145_v62 = vrot.slane %v1747_v42, %v5085_v0  ;;  %v2150_v3 = vrot.slane %v1748_v51, %v5088_v1  ;;  %v1489_v30 = vpack.c.bf16 %v1395_v12, %v1394_v50  ;;  %v1263_v5 = vpop.xlane.xlu1 %1262  ;;  %2870 = vmatpush2.bf16.msra.mxu1 %v4276_v52  ;;  %v4312_v21 = vld [vmem:[%s4886_s30 + $0x128] ss:$16 sps:$4 sm:$0xff]   ;;  %v4320_v42 = vld [vmem:[%s4886_s30 + $0x10c] ss:$16 sps:$4 sm:$0xff]  }
 0x193   : > { %v1260_v8 = vpop.xlane.xlu0 %1259  ;;  %v1443_v11 = vmul.f32 0.020408163, %v1263_v5  ;;  %2871 = vmatprep.subr.bf16.mxu1 %v4284_v58  ;;  %v4318_v50 = vld [vmem:[%s4886_s30 + $0x108] ss:$16 sps:$4 sm:$0xff]  }
 0x194   : > { %v2146_v9 = vsel %vm1807_vm4, %v2145_v62, %v2141_v6  ;;  %v1683_v23 = vunpack.c.l.b16 %v1489_v30  ;;  %v1684_v10 = vunpack.c.h.b16 %v1489_v30  ;;  %v1442_v43 = vmul.f32 0.020408163, %v1260_v8 }
 0x195   : > { %v5389_v17 = vsel %vm1814_vm5, %v2150_v3, %v2146_v9 }
 0x196   : > { %v1806_v24 = vrot.slane %v1683_v23, %v5085_v0  ;;  %v1813_v25 = vrot.slane %v1684_v10, %v5088_v1  ;;  %v1513_v63 = vpack.c.bf16 %v1443_v11, %v1442_v43  ;;  %v1173_v6 = vpop.xlane.xlu1 %1172  ;;  %2872 = vmatpush2.bf16.msra.mxu1 %v4282_v26 }
 0x197   : > { %v1170_v14 = vpop.xlane.xlu0 %1169  ;;  %2873 = vmatprep.subr.bf16.mxu1 %v4290_v18  ;;  %v1413_v3 = vmul.f32 0.020408163, %v1173_v6 }
 0x198   : > { %v1808_v2 = vsel %vm1807_vm4, %v1806_v24, %v1801_v27  ;;  %v1731_v54 = vunpack.c.l.b16 %v1513_v63  ;;  %v1732_v55 = vunpack.c.h.b16 %v1513_v63  ;;  %v4294_v27 = vld [vmem:[%s4886_s30 + $0x188] ss:$16 sps:$4 sm:$0xff]   ;;  %v1412_v30 = vmul.f32 0.020408163, %v1170_v14 }
 0x199   : > { %v5397_v32 = vsel %vm1814_vm5, %v1813_v25, %v1808_v2 }
 0x19a   : > { %v2066_v33 = vrot.slane %v1731_v54, %v5085_v0  ;;  %v2071_v28 = vrot.slane %v1732_v55, %v5088_v1  ;;  %v1317_v13 = vpop.xlane.xlu1 %1316  ;;  %2874 = vmatpush2.bf16.msra.mxu1 %v4288_v20  ;;  %v4300_v0 = vld [vmem:[%s4886_s30 + $0x168] ss:$16 sps:$4 sm:$0xff]   ;;  %v4308_v1 = vld [vmem:[%s4886_s30 + $0x14c] ss:$16 sps:$4 sm:$0xff]   ;;  %v1498_v26 = vpack.c.bf16 %v1413_v3, %v1412_v30 }
 0x19b   : > { %v1314_v15 = vpop.xlane.xlu0 %1313  ;;  %2875 = vmatprep.subr.bf16.mxu1 %v4296_v31  ;;  %v1461_v9 = vmul.f32 0.020408163, %v1317_v13 }
 0x19c   : > { %v2067_v37 = vsel %vm1807_vm4, %v2066_v33, %v2062_v22  ;;  %v4314_v22 = vld [vmem:[%s4886_s30 + $0x12c] ss:$16 sps:$4 sm:$0xff]   ;;  %v1460_v23 = vmul.f32 0.020408163, %v1314_v15  ;;  %v1701_v55 = vunpack.c.l.b16 %v1498_v26 }
 0x19d   : > { %v5406_v41 = vsel %vm1814_vm5, %v2071_v28, %v2067_v37 }
 0x19e   : > { %v1125_v46 = vpop.xlane.xlu1 %1124  ;;  %2876 = vmatpush2.bf16.msra.mxu1 %v4294_v27  ;;  %v1522_v18 = vpack.c.bf16 %v1461_v9, %v1460_v23  ;;  %v1702_v27 = vunpack.c.h.b16 %v1498_v26 }
 0x19f   : > { %v1122_v47 = vpop.xlane.xlu0 %1121  ;;  %2877 = vmatprep.subr.bf16.mxu1 %v4302_v39  ;;  %v1397_v10 = vmul.f32 0.020408163, %v1125_v46  ;;  %v1918_v39 = vrot.slane %v1701_v55, %v5117_v38 }
 0x1a0   : > { %v1396_v11 = vmul.f32 0.020408163, %v1122_v47  ;;  %v1749_v33 = vunpack.c.l.b16 %v1522_v18  ;;  %v1750_v46 = vunpack.c.h.b16 %v1522_v18 }
 0x1a1   : > { %v1919_v3 = vsel %vm1821_vm6, %v1918_v39, %v5382_v61 }
 0x1a2   : > { %v1269_v59 = vpop.xlane.xlu1 %1268  ;;  %2878 = vmatpush2.bf16.msra.mxu1 %v4300_v0  ;;  %v1490_v2 = vpack.c.bf16 %v1397_v10, %v1396_v11 }
 0x1a3   : > { %v1266_v60 = vpop.xlane.xlu0 %1265  ;;  %2879 = vmatprep.subr.bf16.mxu1 %v4308_v1  ;;  %v1445_v24 = vmul.f32 0.020408163, %v1269_v59  ;;  %v2155_v59 = vrot.slane %v1749_v33, %v5117_v38 }
 0x1a4   : > { %v1444_v25 = vmul.f32 0.020408163, %v1266_v60  ;;  %v1685_v28 = vunpack.c.l.b16 %v1490_v2  ;;  %v1686_v60 = vunpack.c.h.b16 %v1490_v2 }
 0x1a6   : > { %v1179_v49 = vpop.xlane.xlu1 %1178  ;;  %2880 = vmatpush2.bf16.msra.mxu1 %v4306_v48  ;;  %v1514_v6 = vpack.c.bf16 %v1445_v24, %v1444_v25  ;;  %v1827_v23 = vrot.slane %v1686_v60, %v5120_v4 }
 0x1a7   : > { %v1176_v44 = vpop.xlane.xlu0 %1175  ;;  %2881 = vmatprep.subr.bf16.mxu1 %v4314_v22  ;;  %v1415_v20 = vmul.f32 0.020408163, %v1179_v49 }
 0x1a8   : > { %v1414_v54 = vmul.f32 0.020408163, %v1176_v44  ;;  %v1733_v48 = vunpack.c.l.b16 %v1514_v6  ;;  %v1820_v44 = vrot.slane %v1685_v28, %v5117_v38  ;;  %v1734_v10 = vunpack.c.h.b16 %v1514_v6 }
 0x1aa   : > { %v1323_v51 = vpop.xlane.xlu1 %1322  ;;  %2882 = vmatpush2.bf16.msra.mxu1 %v4312_v21  ;;  %v1499_v13 = vpack.c.bf16 %v1415_v20, %v1414_v54  ;;  %v2081_v28 = vrot.slane %v1734_v10, %v5120_v4 }
 0x1ab   : > { %v1320_v12 = vpop.xlane.xlu0 %1319  ;;  %2883 = vmatprep.subr.bf16.mxu1 %v4320_v42  ;;  %v1463_v15 = vmul.f32 0.020408163, %v1323_v51 }
 0x1ac   : > { %v1462_v37 = vmul.f32 0.020408163, %v1320_v12  ;;  %v1703_v51 = vunpack.c.l.b16 %v1499_v13  ;;  %v1704_v11 = vunpack.c.h.b16 %v1499_v13 }
 0x1ae   : > { %v1131_v52 = vpop.xlane.xlu1 %1130  ;;  %2884 = vmatpush2.bf16.msra.mxu1 %v4318_v50  ;;  %v1523_v12 = vpack.c.bf16 %v1463_v15, %v1462_v37  ;;  %v1928_v18 = vrot.slane %v1703_v51, %v5127_v45  ;;  %v1933_v13 = vrot.slane %v1704_v11, %v5142_v7 }
 0x1af   : > { %v1128_v53 = vpop.xlane.xlu0 %1127  ;;  %v1399_v47 = vmul.f32 0.020408163, %v1131_v52  ;;  %v1923_v52 = vrot.slane %v1702_v27, %v5120_v4 }
 0x1b0   : > { %v1398_v0 = vmul.f32 0.020408163, %v1128_v53  ;;  %v2160_v53 = vrot.slane %v1750_v46, %v5120_v4  ;;  %v1751_v24 = vunpack.c.l.b16 %v1523_v12 }
 0x1b1   : > { %v1924_v20 = vsel %vm1828_vm7, %v1923_v52, %v1919_v3 }
 0x1b2   : > { %v1275_v58 = vpop.xlane.xlu1 %1274  ;;  %v1491_v30 = vpack.c.bf16 %v1399_v47, %v1398_v0  ;;  %v1929_v37 = vsel %vm1835_vm8, %v1928_v18, %v1924_v20 }
 0x1b3   : > { %v1272_v62 = vpop.xlane.xlu0 %1271  ;;  %v1447_v22 = vmul.f32 0.020408163, %v1275_v58  ;;  %v2156_v58 = vsel %vm1821_vm6, %v2155_v59, %v5389_v17 }
 0x1b4   : > { %v1446_v21 = vmul.f32 0.020408163, %v1272_v62  ;;  %v2076_v62 = vrot.slane %v1733_v48, %v5117_v38  ;;  %v1687_v17 = vunpack.c.l.b16 %v1491_v30  ;;  %v2161_v38 = vsel %vm1828_vm7, %v2160_v53, %v2156_v58 }
 0x1b6   : > { %v1185_v5 = vpop.xlane.xlu1 %1184  ;;  %v1515_v61 = vpack.c.bf16 %v1447_v22, %v1446_v21  ;;  %v1834_v46 = vrot.slane %v1687_v17, %v5127_v45 }
 0x1b7   : > { %v1182_v8 = vpop.xlane.xlu0 %1181  ;;  %v1417_v42 = vmul.f32 0.020408163, %v1185_v5 }
 0x1b8   : > { %v1416_v50 = vmul.f32 0.020408163, %v1182_v8  ;;  %v1822_v8 = vsel %vm1821_vm6, %v1820_v44, %v5397_v32  ;;  %v2077_v32 = vsel %vm1821_vm6, %v2076_v62, %v5406_v41  ;;  %v1736_v60 = vunpack.c.h.b16 %v1515_v61 }
 0x1b9   : > { %v1829_v6 = vsel %vm1828_vm7, %v1827_v23, %v1822_v8  ;;  %v2082_v21 = vsel %vm1828_vm7, %v2081_v28, %v2077_v32 }
 0x1ba   : > { %v1329_v43 = vpop.xlane.xlu1 %1328  ;;  %v1500_v26 = vpack.c.bf16 %v1417_v42, %v1416_v50  ;;  %v1836_v62 = vsel %vm1835_vm8, %v1834_v46, %v1829_v6 }
 0x1bb   : > { %v1326_v63 = vpop.xlane.xlu0 %1325  ;;  %v1465_v25 = vmul.f32 0.020408163, %v1329_v43  ;;  %v1752_v43 = vunpack.c.h.b16 %v1523_v12  ;;  %v1934_v12 = vsel %vm1842_vm9, %v1933_v13, %v1929_v37 }
 0x1bc   : > { %v1464_v2 = vmul.f32 0.020408163, %v1326_v63  ;;  %v1735_v63 = vunpack.c.l.b16 %v1515_v61  ;;  %v1705_v15 = vunpack.c.l.b16 %v1500_v26  ;;  %v1706_v4 = vunpack.c.h.b16 %v1500_v26 }
 0x1bd   : > { %v2170_v42 = vrot.slane %v1752_v43, %v5142_v7 }
 0x1be   : > { %v1137_v31 = vpop.xlane.xlu1 %1136  ;;  %v1524_v39 = vpack.c.bf16 %v1465_v25, %v1464_v2  ;;  %v2086_v50 = vrot.slane %v1735_v63, %v5127_v45  ;;  %v1938_v51 = vrot.slane %v1705_v15, %v5157_v16 }
 0x1bf   : > { %v1134_v14 = vpop.xlane.xlu0 %1133  ;;  %v1401_v54 = vmul.f32 0.020408163, %v1137_v31  ;;  %v2165_v31 = vrot.slane %v1751_v24, %v5127_v45  ;;  %v1943_v45 = vrot.slane %v1706_v4, %v5254_v35 }
 0x1c0   : > { %v1400_v55 = vmul.f32 0.020408163, %v1134_v14  ;;  %v1688_v14 = vunpack.c.h.b16 %v1491_v30  ;;  %v1753_v53 = vunpack.c.l.b16 %v1524_v39  ;;  %v2087_v26 = vsel %vm1835_vm8, %v2086_v50, %v2082_v21 }
 0x1c1   : > { %v2166_v3 = vsel %vm1835_vm8, %v2165_v31, %v2161_v38  ;;  %v1939_v18 = vsel %vm1849_vm10, %v1938_v51, %v1934_v12  ;;  %v1754_v24 = vunpack.c.h.b16 %v1524_v39 }
 0x1c2   : > { %v5416_v1 = vpop.xlane.xlu1 %1280  ;;  %v1492_v47 = vpack.c.bf16 %v1401_v54, %v1400_v55  ;;  %v1841_v52 = vrot.slane %v1688_v14, %v5142_v7  ;;  %v2171_v61 = vsel %vm1842_vm9, %v2170_v42, %v2166_v3  ;;  %v1944_v38 = vsel %vm1856_vm11, %v1943_v45, %v1939_v18 }
 0x1c3   : > { %v1278_v49 = vpop.xlane.xlu0 %1277 }
 0x1c4   : > { %v1689_v30 = vunpack.c.l.b16 %v1492_v47  ;;  %v1448_v58 = vmul.f32 0.020408163, %v1278_v49  ;;  %v1690_v49 = vunpack.c.h.b16 %v1492_v47  ;;  %v1843_v20 = vsel %vm1842_vm9, %v1841_v52, %v1836_v62 }
 0x1c6   : > { %v1191_v9 = vpop.xlane.xlu1 %1190  ;;  %v1855_v37 = vrot.slane %v1690_v49, %v5254_v35 }
 0x1c7   : > { %v1188_v5 = vpop.xlane.xlu0 %1187  ;;  %v1419_v0 = vmul.f32 0.020408163, %v1191_v9  ;;  %v1449_v9 = vmul.f32 0.020408163, %v5416_v1  ;;  %v2175_v1 = vrot.slane %v1753_v53, %v5157_v16 }
 0x1c8   : > { %v1418_v59 = vmul.f32 0.020408163, %v1188_v5  ;;  %v2091_v5 = vrot.slane %v1736_v60, %v5142_v7  ;;  %v1848_v7 = vrot.slane %v1689_v30, %v5157_v16 }
 0x1c9   : > { %v1516_v17 = vpack.c.bf16 %v1449_v9, %v1448_v58  ;;  %v2176_v15 = vsel %vm1849_vm10, %v2175_v1, %v2171_v61 }
 0x1ca   : > { %v1335_v33 = vpop.xlane.xlu1 %1334  ;;  %v1501_v23 = vpack.c.bf16 %v1419_v0, %v1418_v59  ;;  %v1850_v39 = vsel %vm1849_vm10, %v1848_v7, %v1843_v20 }
 0x1cb   : > { %v1332_v27 = vpop.xlane.xlu0 %1331  ;;  %v1467_v48 = vmul.f32 0.020408163, %v1335_v33  ;;  %v2092_v33 = vsel %vm1842_vm9, %v2091_v5, %v2087_v26  ;;  %v1737_v46 = vunpack.c.l.b16 %v1516_v17  ;;  %v1857_v51 = vsel %vm1856_vm11, %v1855_v37, %v1850_v39 }
 0x1cc   : > { %v1466_v22 = vmul.f32 0.020408163, %v1332_v27  ;;  %v1707_v54 = vunpack.c.l.b16 %v1501_v23  ;;  %v2180_v27 = vrot.slane %v1754_v24, %v5254_v35  ;;  %v1708_v31 = vunpack.c.h.b16 %v1501_v23 }
 0x1cd   : > { %v2096_v53 = vrot.slane %v1737_v46, %v5157_v16 }
 0x1ce   : > { %v1143_v41 = vpop.xlane.xlu1 %1142  ;;  %v1525_v8 = vpack.c.bf16 %v1467_v48, %v1466_v22  ;;  %v1948_v47 = vrot.slane %v1707_v54, %v5272_v56  ;;  %v1953_v12 = vrot.slane %v1708_v31, %v5275_v57 }
 0x1cf   : > { %v1140_v44 = vpop.xlane.xlu0 %1139  ;;  %v1403_v25 = vmul.f32 0.020408163, %v1143_v41  ;;  %v1738_v41 = vunpack.c.h.b16 %v1516_v17  ;;  %v2097_v17 = vsel %vm1849_vm10, %v2096_v53, %v2092_v33  ;;  %v4327_v53 = vld [vmem:[%s4886_s30 + $0x2a8] ss:$16 sps:$4 sm:$0xff]  }
 0x1d0   : > { %v1402_v2 = vmul.f32 0.020408163, %v1140_v44  ;;  %v1755_v6 = vunpack.c.l.b16 %v1525_v8  ;;  %v1756_v60 = vunpack.c.h.b16 %v1525_v8  ;;  %v2181_v44 = vsel %vm1856_vm11, %v2180_v27, %v2176_v15 }
 0x1d1   : > { %v1949_v23 = vsel %vm1863_vm12, %v1948_v47, %v1944_v38 }
 0x1d2   : > { %v1287_v10 = vpop.xlane.xlu1 %1286  ;;  %v1493_v14 = vpack.c.bf16 %v1403_v25, %v1402_v2  ;;  %v2185_v4 = vrot.slane %v1755_v6, %v5272_v56  ;;  %v2190_v62 = vrot.slane %v1756_v60, %v5275_v57  ;;  %v1954_v49 = vsel %vm1870_vm13, %v1953_v12, %v1949_v23  ;;  %v4333_v23 = vld [vmem:[%s4886_s30 + $0x268] ss:$16 sps:$4 sm:$0xff]  }
 0x1d3   : > { %v1284_v11 = vpop.xlane.xlu0 %1283  ;;  %v1451_v13 = vmul.f32 0.020408163, %v1287_v10  ;;  %v2101_v10 = vrot.slane %v1738_v41, %v5254_v35 }
 0x1d4   : > { %v1450_v43 = vmul.f32 0.020408163, %v1284_v11  ;;  %v1691_v3 = vunpack.c.l.b16 %v1493_v14  ;;  %v2186_v8 = vsel %vm1863_vm12, %v2185_v4, %v2181_v44  ;;  %v1692_v24 = vunpack.c.h.b16 %v1493_v14 }
 0x1d5   : > { %v2191_v6 = vsel %vm1870_vm13, %v2190_v62, %v2186_v8  ;;  %v4341_v62 = vld [vmem:[%s4886_s30 + $0x22c] ss:$16 sps:$4 sm:$0xff]   ;;  %v4342_v8 = vld [vmem:[%s4886_s30 + $0x208] ss:$16 sps:$4 sm:$0xff]  }
 0x1d6   : > { %v1197_v55 = vpop.xlane.xlu1 %1196  ;;  %v1517_v21 = vpack.c.bf16 %v1451_v13, %v1450_v43  ;;  %v1862_v16 = vrot.slane %v1691_v3, %v5272_v56  ;;  %v1869_v43 = vrot.slane %v1692_v24, %v5275_v57  ;;  %v4324_v3 = vld [vmem:[%s4886_s30 + $0x2c8] ss:$16 sps:$4 sm:$0xff]  }
 0x1d7   : > { %v1421_v32 = vmul.f32 0.020408163, %v1197_v55  ;;  %v1194_v28 = vpop.xlane.xlu0 %1193 }
 0x1d8   : > { %v1420_v63 = vmul.f32 0.020408163, %v1194_v28  ;;  %v1739_v11 = vunpack.c.l.b16 %v1517_v21  ;;  %v1740_v54 = vunpack.c.h.b16 %v1517_v21  ;;  %v1864_v33 = vsel %vm1863_vm12, %v1862_v16, %v1857_v51  ;;  %v4321_v51 = vld [vmem:[%s4886_s30 + $0x2e8] ss:$16 sps:$4 sm:$0xff]  }
 0x1d9   : > { %v1871_v4 = vsel %vm1870_vm13, %v1869_v43, %v1864_v33 }
 0x1da   : > { %v1502_v0 = vpack.c.bf16 %v1421_v32, %v1420_v63  ;;  %v1341_v59 = vpop.xlane.xlu1 %1340  ;;  %v2106_v32 = vrot.slane %v1739_v11, %v5272_v56  ;;  %v2102_v56 = vsel %vm1856_vm11, %v2101_v10, %v2097_v17  ;;  %v2111_v46 = vrot.slane %v1740_v54, %v5275_v57  ;;  %v4338_v10 = vld [vmem:[%s4886_s30 + $0x24c] ss:$16 sps:$4 sm:$0xff]  }
 0x1db   : > { %v1469_v48 = vmul.f32 0.020408163, %v1341_v59  ;;  %v1338_v22 = vpop.xlane.xlu0 %1337 }
 0x1dc   : > { %v1709_v42 = vunpack.c.l.b16 %v1502_v0  ;;  %v1468_v50 = vmul.f32 0.020408163, %v1338_v22  ;;  %v1710_v52 = vunpack.c.h.b16 %v1502_v0  ;;  %v2107_v0 = vsel %vm1863_vm12, %v2106_v32, %v2102_v56 }
 0x1dd   : > { %v2112_v44 = vsel %vm1870_vm13, %v2111_v46, %v2107_v0 }
 0x1de   : > { %v1958_v30 = vrot.slane %v1709_v42, %v5293_v19  ;;  %v1526_v9 = vpack.c.bf16 %v1469_v48, %v1468_v50  ;;  %v1149_v58 = vpop.xlane.xlu1 %1148  ;;  %v1963_v1 = vrot.slane %v1710_v52, %v5305_v29  ;;  %v4329_v52 = vld [vmem:[%s4886_s30 + $0x2ac] ss:$16 sps:$4 sm:$0xff]  }
 0x1df   : > { %v1405_v5 = vmul.f32 0.020408163, %v1149_v58  ;;  %v1146_v45 = vpop.xlane.xlu0 %1145  ;;  %v4335_v58 = vld [vmem:[%s4886_s30 + $0x26c] ss:$16 sps:$4 sm:$0xff]  }
 0x1e0   : > { %v1757_v61 = vunpack.c.l.b16 %v1526_v9  ;;  %v1758_v26 = vunpack.c.h.b16 %v1526_v9  ;;  %v1404_v18 = vmul.f32 0.020408163, %v1146_v45  ;;  %v1959_v7 = vsel %vm1877_vm14, %v1958_v30, %v1954_v49  ;;  %v4332_v30 = vld [vmem:[%s4886_s30 + $0x28c] ss:$16 sps:$4 sm:$0xff]   ;;  %v4330_v9 = vld [vmem:[%s4886_s30 + $0x288] ss:$16 sps:$4 sm:$0xff]  }
 0x1e1   : > { %v1964_v15 = vsel %vm1884_vm15, %v1963_v1, %v1959_v7  ;;  %v4344_v45 = vld [vmem:[%s4886_s30 + $0x20c] ss:$16 sps:$4 sm:$0xff]   ;;  %v4614_v7 = vmov 1983009808  }
 0x1e2   : > { %v2195_v25 = vrot.slane %v1757_v61, %v5293_v19  ;;  %v2200_v35 = vrot.slane %v1758_v26, %v5305_v29  ;;  %v1494_v2 = vpack.c.bf16 %v1405_v5, %v1404_v18  ;;  %v1293_v20 = vpop.xlane.xlu1 %1292  ;;  %v4339_v5 = vld [vmem:[%s4886_s30 + $0x228] ss:$16 sps:$4 sm:$0xff]   ;;  %v2942_v17 = vunpack.c.l.s4 %v4614_v7 }
 0x1e3   : > { %v1453_v55 = vmul.f32 0.020408163, %v1293_v20  ;;  %v1290_v38 = vpop.xlane.xlu0 %1289 }
 0x1e4   : > { %v1693_v28 = vunpack.c.l.b16 %v1494_v2  ;;  %v1452_v27 = vmul.f32 0.020408163, %v1290_v38  ;;  %v2196_v13 = vsel %vm1877_vm14, %v2195_v25, %v2191_v6  ;;  %v1694_v63 = vunpack.c.h.b16 %v1494_v2 }
 0x1e5   : > { %v2201_v37 = vsel %vm1884_vm15, %v2200_v35, %v2196_v13 }
 0x1e6   : > { %v1876_v31 = vrot.slane %v1693_v28, %v5293_v19  ;;  %v1518_v14 = vpack.c.bf16 %v1453_v55, %v1452_v27  ;;  %v2283_v39 = vsel %vm2281_vm0, %v2201_v37, %v1964_v15  ;;  %v1883_v60 = vrot.slane %v1694_v63, %v5305_v29 }
 0x1e7   : > { %v2286_v47 = vpack.c.b16 %v2283_v39, %v2283_v39  ;;  %v2943_v55 = vunpack.c.0.s8 %v2942_v17 }
 0x1e8   : > { %v1741_v59 = vunpack.c.l.b16 %v1518_v14  ;;  %v1742_v41 = vunpack.c.h.b16 %v1518_v14  ;;  %v1878_v57 = vsel %vm1877_vm14, %v1876_v31, %v1871_v4  ;;  %v1486_v31 = vld [vmem:[#allocation2] sm:$0xff] }
 0x1e9   : > { %2803 = vmatprep.mubr.bf16.mxu0 %v2286_v47  ;;  %2885 = vmatprep.mubr.bf16.mxu1 %v2286_v47  ;;  %v1885_v42 = vsel %vm1884_vm15, %v1883_v60, %v1878_v57  ;;  %v5522_v28 = vsub.s32 %v2943_v55, %v5051_v34 }
 0x1ea   : > { %v2116_v48 = vrot.slane %v1741_v59, %v5293_v19  ;;  %v2121_v22 = vrot.slane %v1742_v41, %v5305_v29  ;;  %v4326_v29 = vld [vmem:[%s4886_s30 + $0x2cc] ss:$16 sps:$4 sm:$0xff]  }
 0x1ec   : > { %v2117_v21 = vsel %vm1877_vm14, %v2116_v48, %v2112_v44 }
 0x1ed   : > { %v2122_v50 = vsel %vm1884_vm15, %v2121_v22, %v2117_v21 }
 0x1ee   : > { %v2282_v12 = vsel %vm2281_vm0, %v2122_v50, %v1885_v42 }
 0x1ef   : > { %v2285_v19 = vpack.c.b16 %v2282_v12, %v2282_v12 }
 0x1f1   : > { %2804 = vmatmul.mubr.bf16.vlgmr.msra.gmra.mxu0 %v2285_v19  ;;  %2886 = vmatmul.mubr.bf16.vlgmr.msra.gmra.mxu1 %v2285_v19 }
 0x1f2   : > { %2895 = vmatpush1.bf16.msra.mxu0 %v4321_v51  ;;  %2926 = vmatprep.mubr.bf16.mxu0 %v4613_v36  ;;  %v4336_v36 = vld [vmem:[%s4886_s30 + $0x248] ss:$16 sps:$4 sm:$0xff]  }
 0x1f3   : > { %2896 = vmatprep.subr.bf16.mxu0 %v4326_v29 }
 0x1f6   : > { %2897 = vmatpush1.bf16.msra.mxu0 %v4324_v3 }
 0x1f7   : > { %2898 = vmatprep.subr.bf16.mxu0 %v4329_v52 }
 0x1fa   : > { %2899 = vmatpush1.bf16.msra.mxu0 %v4327_v53 }
 0x1fb   : > { %2900 = vmatprep.subr.bf16.mxu0 %v4332_v30 }
 0x1fe   : > { %2901 = vmatpush1.bf16.msra.mxu0 %v4330_v9 }
 0x1ff   : > { %2902 = vmatprep.subr.bf16.mxu0 %v4335_v58 }
 0x202   : > { %2903 = vmatpush1.bf16.msra.mxu0 %v4333_v23 }
 0x203   : > { %2904 = vmatprep.subr.bf16.mxu0 %v4338_v10 }
 0x206   : > { %2905 = vmatpush1.bf16.msra.mxu0 %v4336_v36 }
 0x207   : > { %2906 = vmatprep.subr.bf16.mxu0 %v4341_v62 }
 0x20a   : > { %2907 = vmatpush1.bf16.msra.mxu0 %v4339_v5 }
 0x20b   : > { %2908 = vmatprep.subr.bf16.mxu0 %v4344_v45 }
 0x20e   : > { %2909 = vmatpush1.bf16.msra.mxu0 %v4342_v8 }
 0x211   : > { %2927 = vmatmul.mubr.bf16.vlgmr.msra.gmra.mxu0 %v5327_v40 }
 0x231   : > { %v2846_v11 = vpop.f32.mrf.mxu1 }
 0x233   : > { %v2848_v61 = vpop.f32.mrf.mxu1 }
 0x235   : > { %v2850_v26 = vpop.f32.mrf.mxu1 }
 0x237   : > { %v2851_v18 = vpop.f32.mrf.mxu1 }
 0x2b1   : > { %v2805_v24 = vpop.f32.mrf.mxu0  ;;  %v2887_v16 = vpop.f32.mrf.mxu1 }
 0x2b2   : > { %v2847_v6 = vadd.f32 %v2846_v11, %v2805_v24 }
 0x2b3   : > { %v2807_v1 = vpop.f32.mrf.mxu0  ;;  %v2889_v49 = vpop.f32.mrf.mxu1 }
 0x2b4   : > { %v2849_v54 = vadd.f32 %v2848_v61, %v2807_v1 }
 0x2b5   : > { %v2809_v25 = vpop.f32.mrf.mxu0  ;;  %v2891_v35 = vpop.f32.mrf.mxu1 }
 0x2b6   : > { %v2939_v40 = vcombine.low %v2847_v6, %v2849_v54 }
 0x2b7   : > { %v2810_v2 = vpop.f32.mrf.mxu0  ;;  %v2892_v20 = vpop.f32.mrf.mxu1 }
 0x2b8   : > { %v2947_v37 = vrot.slane %v2939_v40, %v5522_v28 }
 0x2d1   : > { %v2928_v38 = vpop.f32.mrf.mxu0 }
 0x2d2   : > { %v2929_v27 = vadd.f32 %v2928_v38, %v2887_v16 }
 0x2d3   : > { %v2930_v32 = vpop.f32.mrf.mxu0 }
 0x2d4   : > { %v2931_v13 = vadd.f32 %v2930_v32, %v2889_v49 }
 0x2d5   : > { %v2932_v43 = vpop.f32.mrf.mxu0 }
 0x2d6   : > { %v2940_v63 = vcombine.low %v2929_v27, %v2931_v13 }
 0x2d7   : > { %v2933_v15 = vpop.f32.mrf.mxu0 }
 0x2d8   : > { %v2954_v33 = vrot.slane %v2940_v63, %v5522_v28 }
 0x2da   : > { %v2955_v14 = vcombine.low %v2947_v37, %v2954_v33  ;;  %2962 = sbr.rel (%p3727_p6) target bundleno = 1173 (0x495), region = 117 }
 0x2dc   : > { %v2957_v39 = vadd.f32 %v2955_v14, %v1486_v31 }
 0x2de   : > { %2958 = vst [vmem:[#allocation2] sm:$0xff] %v2957_v39 }
 0x2df   : > { %v4345_v56 = vld [vmem:[#allocation9 + $0x78] sm:$0xff]   ;;  %v4349_v59 = vld [vmem:[#allocation9 + $0x70] sm:$0xff]   ;;  %v4353_v48 = vld [vmem:[#allocation9 + $0x68] sm:$0xff]   ;;  %v2968_v36 = vsub.s32 0, %v5051_v34  ;;  %v2972_v5 = vsub.s32 1, %v5051_v34  ;;  %v2976_v8 = vsub.s32 2, %v5051_v34 }
 0x2e0   : > { %v4346_v46 = vld [vmem:[#allocation9 + $0xf8] sm:$0xff]   ;;  %4017 = vmatprep.subr.bf16.mxu0 %v4345_v56  ;;  %v4350_v41 = vld [vmem:[#allocation9 + $0xf0] sm:$0xff]   ;;  %v4354_v22 = vld [vmem:[#allocation9 + $0xe8] sm:$0xff]   ;;  %v2980_v61 = vsub.s32 3, %v5051_v34  ;;  %v4615_v35 = vmov 0.0   ;;  %vm4616_vm1 = vmmov 0  }
 0x2e1   : > { %v4347_v47 = vld [vmem:[#allocation9 + $0x38] sm:$0xff]   ;;  %4039 = vmatprep.subr.bf16.mxu1 %v4346_v46  ;;  %v4351_v60 = vld [vmem:[#allocation9 + $0x30] sm:$0xff]   ;;  %v4355_v57 = vld [vmem:[#allocation9 + $0x28] sm:$0xff]   ;;  %vm3484_vm2 = vcmask 9216  }
 0x2e2   : > { %v4348_v0 = vld [vmem:[#allocation9 + $0xb8] sm:$0xff]   ;;  %4018 = vmatpush3.bf16.msra.mxu0 %v4347_v47  ;;  %v4352_v4 = vld [vmem:[#allocation9 + $0xb0] sm:$0xff]   ;;  %v4356_v44 = vld [vmem:[#allocation9 + $0xa8] sm:$0xff]  }
 0x2e3   : > { %4040 = vmatpush3.bf16.msra.mxu1 %v4348_v0  ;;  %4019 = vmatprep.subr.bf16.mxu0 %v4349_v59  ;;  %v4357_v21 = vld [vmem:[#allocation9 + $0x60] sm:$0xff]   ;;  %v4361_v12 = vld [vmem:[#allocation9 + $0x58] sm:$0xff]   ;;  %v4365_v52 = vld [vmem:[#allocation9 + $0x50] sm:$0xff]  }
 0x2e4   : > { %4041 = vmatprep.subr.bf16.mxu1 %v4350_v41  ;;  %v4358_v42 = vld [vmem:[#allocation9 + $0xe0] sm:$0xff]   ;;  %v4362_v19 = vld [vmem:[#allocation9 + $0xd8] sm:$0xff]   ;;  %v4366_v53 = vld [vmem:[#allocation9 + $0xd0] sm:$0xff]  }
 0x2e5   : > { %v4359_v50 = vld [vmem:[#allocation9 + $0x20] sm:$0xff]   ;;  %v4363_v29 = vld [vmem:[#allocation9 + $0x18] sm:$0xff]   ;;  %v4367_v30 = vld [vmem:[#allocation9 + $0x10] sm:$0xff]  }
 0x2e6   : > { %4020 = vmatpush3.bf16.msra.mxu0 %v4351_v60  ;;  %v4360_v51 = vld [vmem:[#allocation9 + $0xa0] sm:$0xff]   ;;  %v4364_v3 = vld [vmem:[#allocation9 + $0x98] sm:$0xff]   ;;  %v4368_v9 = vld [vmem:[#allocation9 + $0x90] sm:$0xff]  }
 0x2e7   : > { %4042 = vmatpush3.bf16.msra.mxu1 %v4352_v4  ;;  %4021 = vmatprep.subr.bf16.mxu0 %v4353_v48  ;;  %v4369_v58 = vld [vmem:[#allocation9 + $0x48] sm:$0xff]   ;;  %v4373_v45 = vld [vmem:[#allocation9 + $0x40] sm:$0xff]   ;;  %v2964_v24 = vld [vmem:[#allocation7] sm:$0xf] }
 0x2e8   : > { %4043 = vmatprep.subr.bf16.mxu1 %v4354_v22  ;;  %v4370_v23 = vld [vmem:[#allocation9 + $0xc8] sm:$0xff]   ;;  %v4374_v11 = vld [vmem:[#allocation9 + $0xc0] sm:$0xff]   ;;  %v2969_v16 = vrot.slane %v2964_v24, %v2968_v36  ;;  %v2973_v1 = vrot.slane %v2964_v24, %v2972_v5  ;;  %v2977_v49 = vrot.slane %v2964_v24, %v2976_v8  ;;  %v2981_v25 = vrot.slane %v2964_v24, %v2980_v61  ;;  %v2963_v7 = vld [vmem:[#allocation2] sm:$0xff] }
 0x2e9   : > { %v4371_v10 = vld [vmem:[#allocation9 + $0x8] sm:$0xff]   ;;  %v4375_v26 = vld [vmem:[#allocation9] sm:$0xff]   ;;  %v4380_v14 = vld [vmem:[%s5599_s5 + $0x20] sm:$0xff]  }
 0x2ea   : > { %4022 = vmatpush3.bf16.msra.mxu0 %v4355_v57  ;;  %v4372_v62 = vld [vmem:[#allocation9 + $0x88] sm:$0xff]   ;;  %v4376_v18 = vld [vmem:[#allocation9 + $0x80] sm:$0xff]   ;;  %v2982_v2 = vcombine.low %v2969_v16, %v2973_v1  ;;  %v2983_v20 = vcombine.low %v2977_v49, %v2981_v25  ;;  %v4384_v47 = vld [vmem:[%s5599_s5] sm:$0xff]  }
 0x2eb   : > { %4044 = vmatpush3.bf16.msra.mxu1 %v4356_v44  ;;  %4023 = vmatprep.subr.bf16.mxu0 %v4357_v21  ;;  %v4377_v15 = vld [vmem:[%s5599_s5 + $0x38] sm:$0xff]   ;;  %v4378_v31 = vld [vmem:[%s5599_s5 + $0x30] sm:$0xff]   ;;  %v4383_v46 = vld [vmem:[%s5599_s5 + $0x8] sm:$0xff]  }
 0x2ec   : > { %4045 = vmatprep.subr.bf16.mxu1 %v4358_v42  ;;  %v2990_v17 = vrot.slane %v2982_v2, %v5522_v28  ;;  %v2997_v34 = vrot.slane %v2983_v20, %v5522_v28  ;;  %v4381_v39 = vld [vmem:[%s5599_s5 + $0x18] sm:$0xff]   ;;  %v4382_v56 = vld [vmem:[%s5599_s5 + $0x10] sm:$0xff]   ;;  %v3728_v41 = vld [vmem:[#allocation10] ss:$0 sm:$0xff] }
 0x2ee   : > { %4024 = vmatpush3.bf16.msra.mxu0 %v4359_v50  ;;  %v2998_v54 = vcombine.low %v2990_v17, %v2997_v34 }
 0x2ef   : > { %4046 = vmatpush3.bf16.msra.mxu1 %v4360_v51  ;;  %4025 = vmatprep.subr.bf16.mxu0 %v4361_v12 }
 0x2f0   : > { %4047 = vmatprep.subr.bf16.mxu1 %v4362_v19  ;;  %v3000_v55 = vadd.f32 %v2998_v54, %v2963_v7 }
 0x2f2   : > { %4026 = vmatpush3.bf16.msra.mxu0 %v4363_v29  ;;  %v3001_v38 = vmax.f32 %v3000_v55, 0.0  ;;  %v3761_v29 = vld [vmem:[#allocation12] ss:$0 sm:$0xff] }
 0x2f3   : > { %4048 = vmatpush3.bf16.msra.mxu1 %v4364_v3  ;;  %4027 = vmatprep.subr.bf16.mxu0 %v4365_v52 }
 0x2f4   : > { %4049 = vmatprep.subr.bf16.mxu1 %v4366_v53  ;;  %v3010_v6 = vrot.slane %v3001_v38, %v5522_v28  ;;  %v3003_v32 = vcombine.high %v3001_v38, %v3001_v38 }
 0x2f6   : > { %4028 = vmatpush3.bf16.msra.mxu0 %v4367_v30  ;;  %v3018_v40 = vcombine.high %v3010_v6, %v3010_v6  ;;  %v3017_v27 = vrot.slane %v3003_v32, %v5522_v28  ;;  %v3024_v13 = vpack.c.bf16 %v3010_v6, %v3010_v6  ;;  %v4379_v28 = vld [vmem:[%s5599_s5 + $0x28] sm:$0xff]  }
 0x2f7   : > { %4050 = vmatpush3.bf16.msra.mxu1 %v4368_v9  ;;  %4029 = vmatprep.subr.bf16.mxu0 %v4369_v58 }
 0x2f8   : > { %4051 = vmatprep.subr.bf16.mxu1 %v4370_v23  ;;  %v3025_v43 = vpack.c.bf16 %v3018_v40, %v3018_v40  ;;  %v3019_v63 = vcombine.high %v3017_v27, %v3017_v27  ;;  %v3026_v37 = vpack.c.bf16 %v3017_v27, %v3017_v27 }
 0x2fa   : > { %4030 = vmatpush3.bf16.msra.mxu0 %v4371_v10  ;;  %3323 = vmatprep.mubr.bf16.mxu0 %v3025_v43  ;;  %v3027_v33 = vpack.c.bf16 %v3019_v63, %v3019_v63 }
 0x2fb   : > { %4052 = vmatpush3.bf16.msra.mxu1 %v4372_v62  ;;  %4031 = vmatprep.subr.bf16.mxu0 %v4373_v45 }
 0x2fc   : > { %4053 = vmatprep.subr.bf16.mxu1 %v4374_v11  ;;  %3363 = vmatprep.mubr.bf16.mxu1 %v3027_v33 }
 0x2fe   : > { %4032 = vmatpush3.bf16.msra.mxu0 %v4375_v26 }
 0x2ff   : > { %4054 = vmatpush3.bf16.msra.mxu1 %v4376_v18  ;;  %4070 = vmatprep.subr.bf16.mxu0 %v4615_v35 }
 0x301   : > { %3324 = vmatmul.mubr.bf16.vlgmr.msra.gmra.mxu0 %v3024_v13 }
 0x302   : > { %4071 = vmatpush3.bf16.msra.mxu0 %v4377_v15  ;;  %3364 = vmatmul.mubr.bf16.vlgmr.msra.gmra.mxu1 %v3026_v37 }
 0x303   : > { %4072 = vmatprep.subr.bf16.mxu0 %v4615_v35  ;;  %4086 = vmatprep.mubr.msk.bf16.mxu0 %vm4616_vm1, %v4615_v35 }
 0x306   : > { %4073 = vmatpush3.bf16.msra.mxu0 %v4378_v31 }
 0x307   : > { %4074 = vmatprep.subr.bf16.mxu0 %v4615_v35 }
 0x30a   : > { %4075 = vmatpush3.bf16.msra.mxu0 %v4379_v28 }
 0x30b   : > { %4076 = vmatprep.subr.bf16.mxu0 %v4615_v35 }
 0x30e   : > { %4077 = vmatpush3.bf16.msra.mxu0 %v4380_v14 }
 0x30f   : > { %4078 = vmatprep.subr.bf16.mxu0 %v4615_v35 }
 0x312   : > { %4079 = vmatpush3.bf16.msra.mxu0 %v4381_v39 }
 0x313   : > { %4080 = vmatprep.subr.bf16.mxu0 %v4615_v35 }
 0x316   : > { %4081 = vmatpush3.bf16.msra.mxu0 %v4382_v56 }
 0x317   : > { %4082 = vmatprep.subr.bf16.mxu0 %v4615_v35 }
 0x31a   : > { %4083 = vmatpush3.bf16.msra.mxu0 %v4383_v46 }
 0x31b   : > { %4084 = vmatprep.subr.bf16.mxu0 %v4615_v35 }
 0x31e   : > { %4085 = vmatpush3.bf16.msra.mxu0 %v4384_v47 }
 0x3c1   : > { %v4033_v0 = vpop.f32.mrf.mxu0 }
 0x3c2   : > { %v4055_v59 = vpop.f32.mrf.mxu1 }
 0x3c3   : > { %v4034_v60 = vpop.f32.mrf.mxu0 }
 0x3c4   : > { %v4035_v4 = vadd.f32 %v4034_v60, %v4033_v0  ;;  %v4056_v48 = vpop.f32.mrf.mxu1 }
 0x3c5   : > { %v4036_v22 = vpop.f32.mrf.mxu0  ;;  %v4057_v44 = vadd.f32 %v4056_v48, %v4055_v59 }
 0x3c6   : > { %v3326_v57 = vadd.f32 %v4035_v4, %v3728_v41  ;;  %v4058_v21 = vpop.f32.mrf.mxu1 }
 0x3c7   : > { %v4037_v42 = vpop.f32.mrf.mxu0 }
 0x3c8   : > { %v3366_v50 = vadd.f32 %v4057_v44, %v3326_v57  ;;  %v4059_v51 = vpop.f32.mrf.mxu1 }
 0x3ca   : > { %v3371_v12 = vmax.f32 %v3366_v50, 0.0 }
 0x3cc   : > { %v3372_v19 = vpack.c.bf16 %v3371_v12, %v3371_v12 }
 0x3ce   : > { %4087 = vmatmul.mubr.bf16.vlgmr.msra.gmra.mxu0 %v3372_v19 }
 0x48e   : > { %v3478_v3 = vpop.f32.mrf.mxu0 }
 0x48f   : > { %v3479_v52 = vadd.f32 %v3761_v29, %v3478_v3 }
 0x490   : > { %v4088_v53 = vpop.f32.mrf.mxu0 }
 0x491   : > { %3485 = vst.msk [vmem:[#allocation13] sm:$0x3] %vm3484_vm2, %v3479_v52 }
 0x492   : > { %v3481_v30 = vpop.f32.mrf.mxu0 }
 0x494   : > { %v4089_v9 = vpop.f32.mrf.mxu0 }
 0x495 PF: > { %s5617_s0 = sadd.s32 4294967295, %s4601_s29   ;;  %s4617_s27 = smov [#allocation13]  }
 0x496   : > { %p5561_p5 = scmp.eq.s32.totalorder %s5617_s0, 4  ;;  %s3495_s10 = sshll.u32 %s4617_s27, 4  ;;  %s3496_s10 = int_to_ptr.vmem [resolvable:$true] %s3495_s10 }
 0x497   : > { %s4515_s12 = scalar_lea.vmem %s3496_s10, 32  ;;  %p4522_p9 = scmp.lt.s32.totalorder %s3496_s10, %s3496_s10 }
 0x498   : > { %p4516_p7 = scmp.ne.s32.totalorder %s3496_s10, %s4515_s12  ;;  %p4523_p11 = scmp.lt.s32.totalorder %s4515_s12, %s4515_s12 }
 0x49a   : > { %p4517_p12 = pnand %p4516_p7, %p5561_p5  ;;  %p4524_p0 = por %p4523_p11, %p4522_p9 }
 0x49c   : > { %p4518_p13 = pneg %p4517_p12 }
 0x49e   : > { %p4525_p8 = pnand %p4524_p0, %p4518_p13 }
 0x4a0   : > { %4528 = shalt.err (!%p4525_p8)
}
 0x4a1   : > { %4113 = dma.vmem_to_hbm [thread:$0]  (%p5561_p5), %s3496_s10, 32, %s5601_s7, [#allocation6]  }
 0x4a2   : > { %4576 = dma.done.wait (%p5561_p5), [#allocation6], 32  }
 0x4a3   : > { %4578 = vsyncadd (%p5561_p5), [#allocation6], 4294967264 }
 0x4a4 PF: > { %s23_s29 = sadd.s32 1, %s4601_s29   ;;  %s5619_s24 = smov %s4585_s25 }
 0x4a5   : > { %p20_p10 = scmp.ge.s32.totalorder %s23_s29, 7   ;;  %s5620_s25 = smov %s4589_s26 }
 0x4a6   : > { %s5621_s26 = smov %s4716_s14  ;;  %s5622_s27 = smov %s4597_s28 }
 0x4a7   : > { %s5623_s28 = smov %s5625_s8  ;;  %22 = sbr.rel (!%p20_p10) target bundleno = 9 (0x9), region = 159 }
 0x4ac   :  { %3508 = vsyncpa [#allocation5], 1 }
 0x4ad   :  { %3510 = vsyncpa [#allocation5 + $0x1], 1 }
 0x4ae   :  { %3511 = vsyncpa [#allocation8], 1 }
 0x4af   :  { %3512 = vsyncpa [#allocation11], 1 }
 0x4b0   :  { %3513 = vsyncpa [#allocation6], 1 }
 0x4b1   :  { %3515 = vsyncpa [#allocation6 + $0x1], 1 }

</bundles_post_ra>
